<compile_context>
chip_gen: v6e
topology: v6e:2x2x1
jax: 0.10.0
libtpu: 0.0.40
codegen_flags: <defaults>
</compile_context>

<pallas_src>
import numpy as np
import jax
import jax.numpy as jnp
from jax import lax
from jax.experimental import pallas as pl
from jax.experimental.pallas import tpu as pltpu


# ----------------------------- fused Pallas kernel --------------------------

def _make_bottleneck_kernel(W, HW, HW_P, P, B, taps_in_bf16):
    tap_dtype = jnp.bfloat16 if taps_in_bf16 else jnp.float32
    inv_hw = 1.0 / float(HW)

    def kernel(x_ref, m_ref,                 # (B, C4, HW_P) f32 ; (9, HW_P) tap_dtype
               w1_ref, b1_ref,               # (P, C4) bf16  ; (P, 1)  f32
               w2_ref, b2_ref,               # (P, 9P) bf16  ; (P, 1)  f32
               w3_ref, b3_ref,               # (C4, P) bf16  ; (C4, 1) f32
               w4_ref, b4_ref,               # (Sq, C4) f32  ; (Sq, 1) f32
               w5_ref, b5_ref,               # (C4, Sq) f32  ; (C4, 1) f32
               o_ref):                       # (B, C4, HW_P) f32
        masks = m_ref[...]                                  # (9, HW_P)
        # center tap mask == "real pixel" mask -> reused for the SE pooling
        valid = masks[4:5, :].astype(jnp.float32)           # (1, HW_P)

        for b in range(B):                                  # static unroll (small B)
            x = x_ref[b]                                    # (C4, HW_P) f32

            # ---- conv1 (1x1, BN scale folded in) + shift + relu
            h1 = jnp.dot(w1_ref[...], x.astype(jnp.bfloat16),
                         preferred_element_type=jnp.float32)        # (P, HW_P)
            h1 = jnp.maximum(h1 + b1_ref[...], 0.0)

            # ---- conv2 (3x3, pad 1): 9 shifted taps -> ONE stacked MXU dot
            h1t = h1.astype(tap_dtype)
            taps = []
            for ky in range(3):
                for kx in range(3):
                    k = ky * 3 + kx
                    off = (ky - 1) * W + (kx - 1)
                    if off == 0:
                        taps.append(h1t)                    # center: always in-bounds
                    else:
                        # tap[:, i] = h1[:, i + off]; wrapped / out-of-image -> 0
                        t = pltpu.roll(h1t, (-off) % HW_P, axis=1)
                        taps.append(t * masks[k:k + 1, :])
            taps = jnp.concatenate(taps, axis=0)            # (9P, HW_P)
            if not taps_in_bf16:
                taps = taps.astype(jnp.bfloat16)            # single cast for the MXU
            h2 = jnp.dot(w2_ref[...], taps,
                         preferred_element_type=jnp.float32)        # (P, HW_P)
            h2 = jnp.maximum(h2 + b2_ref[...], 0.0)

            # ---- conv3 (1x1, BN scale folded in) + shift
            h3 = jnp.dot(w3_ref[...], h2.astype(jnp.bfloat16),
                         preferred_element_type=jnp.float32) + b3_ref[...]   # (C4, HW_P)

            # ---- Squeeze-and-Excite (tiny f32 FCs, once per image)
            pooled = jnp.sum(h3 * valid, axis=1, keepdims=True) * inv_hw     # (C4, 1)
            se = jnp.dot(w4_ref[...], pooled,
                         preferred_element_type=jnp.float32) + b4_ref[...]
            se = jnp.maximum(se, 0.0)
            se = jnp.dot(w5_ref[...], se,
                         preferred_element_type=jnp.float32) + b5_ref[...]
            se = jax.nn.sigmoid(se)                                          # (C4, 1)

            # ---- scale + residual + final relu (padding columns sliced off later)
            o_ref[b] = jnp.maximum(se * h3 + x, 0.0)

    return kernel


# ------------------------------ JAX wrapper ---------------------------------

def _fold_bn(gamma, beta, mean, var, eps=1e-5):
    scale = gamma / jnp.sqrt(var + eps)
    shift = beta - mean * scale
    return scale, shift


def _conv2_boundary_masks(H, W, HW_P, dtype):
    """(9, HW_P) 0/1 masks: tap k valid at flat position i (0 on lane padding)."""
    idx = jnp.arange(HW_P)
    yy = idx // W
    xx = idx - yy * W
    in_img = idx < H * W
    rows = []
    for ky in range(3):
        for kx in range(3):
            ok = (in_img
                  & (yy + (ky - 1) >= 0) & (yy + (ky - 1) < H)
                  & (xx + (kx - 1) >= 0) & (xx + (kx - 1) < W))
            rows.append(ok)
    return jnp.stack(rows, axis=0).astype(dtype)


def _pick_batch_tile(N, C4, HW_P):
    """Largest divisor of N whose double-buffered in+out blocks stay small."""
    per_img = C4 * HW_P * 4                      # one f32 image block
    for B in (8, 4, 2, 1):
        if N % B == 0 and 4 * B * per_img <= 8 * 1024 * 1024:
            return B
    return 1


@jax.jit
def bottleneck_forward(x_nchw, params):
    N, Cin, H, W = x_nchw.shape
    P = params["w1"].shape[0]          # planes (torch conv1 weight: (P, Cin, 1, 1))
    C4 = 4 * P
    HW = H * W
    assert Cin == C4, "downsample=None / stride=1 requires inplanes == planes*4"
    assert P % 8 == 0, "conv2 tap stacking assumes planes % 8 == 0"

    HW_P = ((HW + 127) // 128) * 128   # lane-dense padded spatial extent
    B = _pick_batch_tile(N, C4, HW_P)
    taps_in_bf16 = (P % 16 == 0)       # bf16 rolls/masks only when sublane-aligned
    tap_dtype = jnp.bfloat16 if taps_in_bf16 else jnp.float32

    # NCHW -> channel-major flattened (N, C, H*W): just a reshape, no transpose.
    x_flat = x_nchw.reshape(N, Cin, HW)
    if HW_P != HW:
        x_flat = jnp.pad(x_flat, ((0, 0), (0, 0), (0, HW_P - HW)))

    # fold BNs (inference mode); scales go INTO the conv weights (exact).
    s1, b1 = _fold_bn(params["bn1_g"], params["bn1_b"], params["bn1_m"], params["bn1_v"])
    s2, b2 = _fold_bn(params["bn2_g"], params["bn2_b"], params["bn2_m"], params["bn2_v"])
    s3, b3 = _fold_bn(params["bn3_g"], params["bn3_b"], params["bn3_m"], params["bn3_v"])

    w1 = (params["w1"][:, :, 0, 0] * s1[:, None]).astype(jnp.bfloat16)      # (P, Cin)
    # (out, in, ky, kx) -> (out, ky, kx, in) -> (P, 9P)  so column (k*P + in) matches
    # the stacked tap ordering k = ky*3 + kx in the kernel.
    w2 = jnp.transpose(params["w2"], (0, 2, 3, 1)).reshape(P, 9 * P)
    w2 = (w2 * s2[:, None]).astype(jnp.bfloat16)                            # (P, 9P)
    w3 = (params["w3"][:, :, 0, 0] * s3[:, None]).astype(jnp.bfloat16)      # (C4, P)
    b1 = b1[:, None]; b2 = b2[:, None]; b3 = b3[:, None]                    # (C, 1) f32
    w4 = params["w4"][:, :, 0, 0]                                           # (Sq, C4)
    b4 = params["b4"][:, None]                                              # (Sq, 1)
    w5 = params["w5"][:, :, 0, 0]                                           # (C4, Sq)
    b5 = params["b5"][:, None]                                              # (C4, 1)

    masks = _conv2_boundary_masks(H, W, HW_P, tap_dtype)                    # (9, HW_P)

    def bcast(a):   # same (whole) block every grid step
        nd = a.ndim
        return pl.BlockSpec(a.shape, lambda n, nd=nd: (0,) * nd)

    kernel = _make_bottleneck_kernel(W, HW, HW_P, P, B, taps_in_bf16)

    out_flat = pl.pallas_call(
        kernel,
        out_shape=jax.ShapeDtypeStruct((N, C4, HW_P), jnp.float32),
        grid=(N // B,),
        in_specs=[
            pl.BlockSpec((B, Cin, HW_P), lambda n: (n, 0, 0)),
            bcast(masks),
            bcast(w1), bcast(b1),
            bcast(w2), bcast(b2),
            bcast(w3), bcast(b3),
            bcast(w4), bcast(b4),
            bcast(w5), bcast(b5),
        ],
        out_specs=pl.BlockSpec((B, C4, HW_P), lambda n: (n, 0, 0)),
        input_output_aliases={0: 0},     # residual buffer reused as the output
        compiler_params=pltpu.CompilerParams(
            dimension_semantics=("parallel",),
            vmem_limit_bytes=32 * 1024 * 1024,
        ),
    )(x_flat, masks, w1, b1, w2, b2, w3, b3, w4, b4, w5, b5)

    if HW_P != HW:
        out_flat = out_flat[:, :, :HW]
    return out_flat.reshape(N, C4, H, W)


# -------------------------- pure-JAX reference ------------------------------

def bottleneck_reference(x, params, eps=1e-5):
    def conv(t, w, pad):
        return lax.conv_general_dilated(
            t, w, (1, 1), pad, dimension_numbers=("NCHW", "OIHW", "NCHW"),
            precision=lax.Precision.HIGHEST)

    def bn(t, g, b, m, v):
        sh = (1, -1, 1, 1)
        return (t - m.reshape(sh)) / jnp.sqrt(v.reshape(sh) + eps) * g.reshape(sh) + b.reshape(sh)

    relu = lambda t: jnp.maximum(t, 0.0)
    out = relu(bn(conv(x, params["w1"], "VALID"),
                  params["bn1_g"], params["bn1_b"], params["bn1_m"], params["bn1_v"]))
    out = relu(bn(conv(out, params["w2"], ((1, 1), (1, 1))),
                  params["bn2_g"], params["bn2_b"], params["bn2_m"], params["bn2_v"]))
    out = bn(conv(out, params["w3"], "VALID"),
             params["bn3_g"], params["bn3_b"], params["bn3_m"], params["bn3_v"])
    out2 = jnp.mean(out, axis=(2, 3), keepdims=True)
    out2 = relu(conv(out2, params["w4"], "VALID") + params["b4"].reshape(1, -1, 1, 1))
    out2 = jax.nn.sigmoid(conv(out2, params["w5"], "VALID") + params["b5"].reshape(1, -1, 1, 1))
    return relu(out2 * out + x)


# ----------------------------- parameter init -------------------------------

def init_params(key, inplanes, planes, compress_rate=16):
    C4 = planes * 4
    sq = C4 // compress_rate
    ks = jax.random.split(key, 19)
    n = lambda k, shape, s=0.1: (s * jax.random.normal(k, shape)).astype(jnp.float32)
    u = lambda k, shape: jax.random.uniform(k, shape, jnp.float32, 0.5, 1.5)
    return dict(
        w1=n(ks[0], (planes, inplanes, 1, 1)),
        bn1_g=u(ks[1], (planes,)), bn1_b=n(ks[2], (planes,)),
        bn1_m=n(ks[3], (planes,)), bn1_v=u(ks[4], (planes,)),
        w2=n(ks[5], (planes, planes, 3, 3)),
        bn2_g=u(ks[6], (planes,)), bn2_b=n(ks[7], (planes,)),
        bn2_m=n(ks[8], (planes,)), bn2_v=u(ks[9], (planes,)),
        w3=n(ks[10], (C4, planes, 1, 1)),
        bn3_g=u(ks[11], (C4,)), bn3_b=n(ks[12], (C4,)),
        bn3_m=n(ks[13], (C4,)), bn3_v=u(ks[14], (C4,)),
        w4=n(ks[15], (sq, C4, 1, 1)), b4=n(ks[16], (sq,)),
        w5=n(ks[17], (C4, sq, 1, 1)), b5=n(ks[18], (C4,)),
    )


# ---------------------------------- main -------------------------------------

if __name__ == "__main__":
    key = jax.random.PRNGKey(0)

    configs = [
        (2, 8, 16, 16),   # HW = 256 (already a lane multiple of 128)
        (2, 8, 7, 7),     # HW = 49  (exercises the lane-padding + masked-pool path)
    ]
    for cfg_i, (N, planes, H, W) in enumerate(configs):
        k_x, k_p = jax.random.split(jax.random.fold_in(key, cfg_i))
        inplanes = planes * 4          # required since downsample=None, stride=1
        x = jax.random.normal(k_x, (N, inplanes, H, W), dtype=jnp.float32)
        params = init_params(k_p, inplanes, planes)

        out = jax.block_until_ready(bottleneck_forward(x, params))
        ref = jax.block_until_ready(bottleneck_reference(x, params))

        assert out.shape == (N, inplanes, H, W)
        # bf16 matmul inputs vs f32 HIGHEST reference -> relaxed tolerance
        np.testing.assert_allclose(np.asarray(out), np.asarray(ref), rtol=2e-2, atol=2e-2)

    print("KERNEL_OK")
</pallas_src>

<mosaic_0001>
module attributes {stable_mosaic.version = 11 : i64} {
  func.func @kernel(%arg0: i32, %arg1: memref<2x32x256xf32, #tpu.memory_space<vmem>>, %arg2: memref<9x256xf32, #tpu.memory_space<vmem>>, %arg3: memref<8x32xbf16, #tpu.memory_space<vmem>>, %arg4: memref<8x1xf32, #tpu.memory_space<vmem>>, %arg5: memref<8x72xbf16, #tpu.memory_space<vmem>>, %arg6: memref<8x1xf32, #tpu.memory_space<vmem>>, %arg7: memref<32x8xbf16, #tpu.memory_space<vmem>>, %arg8: memref<32x1xf32, #tpu.memory_space<vmem>>, %arg9: memref<2x32xf32, #tpu.memory_space<vmem>>, %arg10: memref<2x1xf32, #tpu.memory_space<vmem>>, %arg11: memref<32x2xf32, #tpu.memory_space<vmem>>, %arg12: memref<32x1xf32, #tpu.memory_space<vmem>>, %arg13: memref<2x32x256xf32, #tpu.memory_space<vmem>>) attributes {dimension_semantics = [#tpu.dimension_semantics<parallel>], iteration_bounds = array<i64: 1>, scalar_prefetch = 0 : i64, scratch_operands = 0 : i64, tpu.core_type = #tpu.core_type<tc>, window_params = [{transform_indices = @transform_0, window_bounds = array<i64: 2, 32, 256>}, {pipeline_mode = #tpu.pipeline_mode<synchronous>, transform_indices = @transform_1, window_bounds = array<i64: 9, 256>}, {pipeline_mode = #tpu.pipeline_mode<synchronous>, transform_indices = @transform_2, window_bounds = array<i64: 8, 32>}, {pipeline_mode = #tpu.pipeline_mode<synchronous>, transform_indices = @transform_3, window_bounds = array<i64: 8, 1>}, {pipeline_mode = #tpu.pipeline_mode<synchronous>, transform_indices = @transform_4, window_bounds = array<i64: 8, 72>}, {pipeline_mode = #tpu.pipeline_mode<synchronous>, transform_indices = @transform_5, window_bounds = array<i64: 8, 1>}, {pipeline_mode = #tpu.pipeline_mode<synchronous>, transform_indices = @transform_6, window_bounds = array<i64: 32, 8>}, {pipeline_mode = #tpu.pipeline_mode<synchronous>, transform_indices = @transform_7, window_bounds = array<i64: 32, 1>}, {pipeline_mode = #tpu.pipeline_mode<synchronous>, transform_indices = @transform_8, window_bounds = array<i64: 2, 32>}, {pipeline_mode = #tpu.pipeline_mode<synchronous>, transform_indices = @transform_9, window_bounds = array<i64: 2, 1>}, {pipeline_mode = #tpu.pipeline_mode<synchronous>, transform_indices = @transform_10, window_bounds = array<i64: 32, 2>}, {pipeline_mode = #tpu.pipeline_mode<synchronous>, transform_indices = @transform_11, window_bounds = array<i64: 32, 1>}, {transform_indices = @transform_12, window_bounds = array<i64: 2, 32, 256>}]} {
    %c0 = arith.constant 0 : index
    %c0_0 = arith.constant 0 : index
    %0 = vector.load %arg2[%c0, %c0_0] : memref<9x256xf32, #tpu.memory_space<vmem>>, vector<9x256xf32>
    %1 = vector.extract_strided_slice %0 {offsets = [4, 0], sizes = [1, 256], strides = [1, 1]} : vector<9x256xf32> to vector<1x256xf32>
    %c0_1 = arith.constant 0 : index
    %c0_2 = arith.constant 0 : index
    %c0_3 = arith.constant 0 : index
    %2 = vector.load %arg1[%c0_1, %c0_2, %c0_3] : memref<2x32x256xf32, #tpu.memory_space<vmem>>, vector<1x32x256xf32>
    %3 = vector.shape_cast %2 : vector<1x32x256xf32> to vector<32x256xf32>
    %c0_4 = arith.constant 0 : index
    %c0_5 = arith.constant 0 : index
    %4 = vector.load %arg3[%c0_4, %c0_5] : memref<8x32xbf16, #tpu.memory_space<vmem>>, vector<8x32xbf16>
    %5 = arith.truncf %3 : vector<32x256xf32> to vector<32x256xbf16>
    %cst = arith.constant dense<0.000000e+00> : vector<8x256xf32>
    %6 = tpu.matmul %4, %5, %cst {dimension_numbers = #tpu.dot_dimension_numbers<[1], [0], [0], [1], [0, 0, 1, 1], [], []>} : vector<8x32xbf16>, vector<32x256xbf16>, vector<8x256xf32> -> vector<8x256xf32>
    %c0_6 = arith.constant 0 : index
    %c0_7 = arith.constant 0 : index
    %7 = vector.load %arg4[%c0_6, %c0_7] : memref<8x1xf32, #tpu.memory_space<vmem>>, vector<8x1xf32>
    %8 = vector.broadcast %7 : vector<8x1xf32> to vector<8x256xf32>
    %9 = arith.addf %6, %8 : vector<8x256xf32>
    %cst_8 = arith.constant 0.000000e+00 : f32
    %10 = vector.broadcast %cst_8 : f32 to vector<8x256xf32>
    %11 = arith.maximumf %9, %10 : vector<8x256xf32>
    %c17_i32 = arith.constant 17 : i32
    %12 = tpu.dynamic_rotate %11 by %c17_i32 dim 1 : vector<8x256xf32>, i32 -> vector<8x256xf32>
    %13 = vector.extract_strided_slice %0 {offsets = [0, 0], sizes = [1, 256], strides = [1, 1]} : vector<9x256xf32> to vector<1x256xf32>
    %14 = vector.broadcast %13 : vector<1x256xf32> to vector<8x256xf32>
    %15 = arith.mulf %12, %14 : vector<8x256xf32>
    %c16_i32 = arith.constant 16 : i32
    %16 = tpu.dynamic_rotate %11 by %c16_i32 dim 1 : vector<8x256xf32>, i32 -> vector<8x256xf32>
    %17 = vector.extract_strided_slice %0 {offsets = [1, 0], sizes = [1, 256], strides = [1, 1]} : vector<9x256xf32> to vector<1x256xf32>
    %18 = vector.broadcast %17 : vector<1x256xf32> to vector<8x256xf32>
    %19 = arith.mulf %16, %18 : vector<8x256xf32>
    %c15_i32 = arith.constant 15 : i32
    %20 = tpu.dynamic_rotate %11 by %c15_i32 dim 1 : vector<8x256xf32>, i32 -> vector<8x256xf32>
    %21 = vector.extract_strided_slice %0 {offsets = [2, 0], sizes = [1, 256], strides = [1, 1]} : vector<9x256xf32> to vector<1x256xf32>
    %22 = vector.broadcast %21 : vector<1x256xf32> to vector<8x256xf32>
    %23 = arith.mulf %20, %22 : vector<8x256xf32>
    %c1_i32 = arith.constant 1 : i32
    %24 = tpu.dynamic_rotate %11 by %c1_i32 dim 1 : vector<8x256xf32>, i32 -> vector<8x256xf32>
    %25 = vector.extract_strided_slice %0 {offsets = [3, 0], sizes = [1, 256], strides = [1, 1]} : vector<9x256xf32> to vector<1x256xf32>
    %26 = vector.broadcast %25 : vector<1x256xf32> to vector<8x256xf32>
    %27 = arith.mulf %24, %26 : vector<8x256xf32>
    %c255_i32 = arith.constant 255 : i32
    %28 = tpu.dynamic_rotate %11 by %c255_i32 dim 1 : vector<8x256xf32>, i32 -> vector<8x256xf32>
    %29 = vector.extract_strided_slice %0 {offsets = [5, 0], sizes = [1, 256], strides = [1, 1]} : vector<9x256xf32> to vector<1x256xf32>
    %30 = vector.broadcast %29 : vector<1x256xf32> to vector<8x256xf32>
    %31 = arith.mulf %28, %30 : vector<8x256xf32>
    %c241_i32 = arith.constant 241 : i32
    %32 = tpu.dynamic_rotate %11 by %c241_i32 dim 1 : vector<8x256xf32>, i32 -> vector<8x256xf32>
    %33 = vector.extract_strided_slice %0 {offsets = [6, 0], sizes = [1, 256], strides = [1, 1]} : vector<9x256xf32> to vector<1x256xf32>
    %34 = vector.broadcast %33 : vector<1x256xf32> to vector<8x256xf32>
    %35 = arith.mulf %32, %34 : vector<8x256xf32>
    %c240_i32 = arith.constant 240 : i32
    %36 = tpu.dynamic_rotate %11 by %c240_i32 dim 1 : vector<8x256xf32>, i32 -> vector<8x256xf32>
    %37 = vector.extract_strided_slice %0 {offsets = [7, 0], sizes = [1, 256], strides = [1, 1]} : vector<9x256xf32> to vector<1x256xf32>
    %38 = vector.broadcast %37 : vector<1x256xf32> to vector<8x256xf32>
    %39 = arith.mulf %36, %38 : vector<8x256xf32>
    %c239_i32 = arith.constant 239 : i32
    %40 = tpu.dynamic_rotate %11 by %c239_i32 dim 1 : vector<8x256xf32>, i32 -> vector<8x256xf32>
    %41 = vector.extract_strided_slice %0 {offsets = [8, 0], sizes = [1, 256], strides = [1, 1]} : vector<9x256xf32> to vector<1x256xf32>
    %42 = vector.broadcast %41 : vector<1x256xf32> to vector<8x256xf32>
    %43 = arith.mulf %40, %42 : vector<8x256xf32>
    %44 = tpu.concatenate %15, %19, %23, %27, %11, %31, %35, %39, %43 in 0 : vector<8x256xf32>, vector<8x256xf32>, vector<8x256xf32>, vector<8x256xf32>, vector<8x256xf32>, vector<8x256xf32>, vector<8x256xf32>, vector<8x256xf32>, vector<8x256xf32> -> vector<72x256xf32>
    %45 = arith.truncf %44 : vector<72x256xf32> to vector<72x256xbf16>
    %c0_9 = arith.constant 0 : index
    %c0_10 = arith.constant 0 : index
    %46 = vector.load %arg5[%c0_9, %c0_10] : memref<8x72xbf16, #tpu.memory_space<vmem>>, vector<8x72xbf16>
    %cst_11 = arith.constant dense<0.000000e+00> : vector<8x256xf32>
    %47 = tpu.matmul %46, %45, %cst_11 {dimension_numbers = #tpu.dot_dimension_numbers<[1], [0], [0], [1], [0, 0, 1, 1], [], []>} : vector<8x72xbf16>, vector<72x256xbf16>, vector<8x256xf32> -> vector<8x256xf32>
    %c0_12 = arith.constant 0 : index
    %c0_13 = arith.constant 0 : index
    %48 = vector.load %arg6[%c0_12, %c0_13] : memref<8x1xf32, #tpu.memory_space<vmem>>, vector<8x1xf32>
    %49 = vector.broadcast %48 : vector<8x1xf32> to vector<8x256xf32>
    %50 = arith.addf %47, %49 : vector<8x256xf32>
    %cst_14 = arith.constant 0.000000e+00 : f32
    %51 = vector.broadcast %cst_14 : f32 to vector<8x256xf32>
    %52 = arith.maximumf %50, %51 : vector<8x256xf32>
    %c0_15 = arith.constant 0 : index
    %c0_16 = arith.constant 0 : index
    %53 = vector.load %arg7[%c0_15, %c0_16] : memref<32x8xbf16, #tpu.memory_space<vmem>>, vector<32x8xbf16>
    %54 = arith.truncf %52 : vector<8x256xf32> to vector<8x256xbf16>
    %cst_17 = arith.constant dense<0.000000e+00> : vector<32x256xf32>
    %55 = tpu.matmul %53, %54, %cst_17 {dimension_numbers = #tpu.dot_dimension_numbers<[1], [0], [0], [1], [0, 0, 1, 1], [], []>} : vector<32x8xbf16>, vector<8x256xbf16>, vector<32x256xf32> -> vector<32x256xf32>
    %c0_18 = arith.constant 0 : index
    %c0_19 = arith.constant 0 : index
    %56 = vector.load %arg8[%c0_18, %c0_19] : memref<32x1xf32, #tpu.memory_space<vmem>>, vector<32x1xf32>
    %57 = vector.broadcast %56 : vector<32x1xf32> to vector<32x256xf32>
    %58 = arith.addf %55, %57 : vector<32x256xf32>
    %59 = vector.broadcast %1 : vector<1x256xf32> to vector<32x256xf32>
    %60 = arith.mulf %58, %59 : vector<32x256xf32>
    %cst_20 = arith.constant dense<0.000000e+00> : vector<32xf32>
    %61 = vector.multi_reduction <add>, %60, %cst_20 [1] : vector<32x256xf32> to vector<32xf32>
    %62 = vector.shape_cast %61 : vector<32xf32> to vector<32x1xf32>
    %cst_21 = arith.constant 3.906250e-03 : f32
    %63 = vector.broadcast %cst_21 : f32 to vector<32x1xf32>
    %64 = arith.mulf %62, %63 : vector<32x1xf32>
    %c0_22 = arith.constant 0 : index
    %c0_23 = arith.constant 0 : index
    %65 = vector.load %arg9[%c0_22, %c0_23] : memref<2x32xf32, #tpu.memory_space<vmem>>, vector<2x32xf32>
    %cst_24 = arith.constant dense<0.000000e+00> : vector<2x1xf32>
    %66 = tpu.matmul %65, %64, %cst_24 {dimension_numbers = #tpu.dot_dimension_numbers<[1], [0], [0], [1], [0, 0, 1, 1], [], []>} : vector<2x32xf32>, vector<32x1xf32>, vector<2x1xf32> -> vector<2x1xf32>
    %c0_25 = arith.constant 0 : index
    %c0_26 = arith.constant 0 : index
    %67 = vector.load %arg10[%c0_25, %c0_26] : memref<2x1xf32, #tpu.memory_space<vmem>>, vector<2x1xf32>
    %68 = arith.addf %66, %67 : vector<2x1xf32>
    %cst_27 = arith.constant 0.000000e+00 : f32
    %69 = vector.broadcast %cst_27 : f32 to vector<2x1xf32>
    %70 = arith.maximumf %68, %69 : vector<2x1xf32>
    %c0_28 = arith.constant 0 : index
    %c0_29 = arith.constant 0 : index
    %71 = vector.load %arg11[%c0_28, %c0_29] : memref<32x2xf32, #tpu.memory_space<vmem>>, vector<32x2xf32>
    %cst_30 = arith.constant dense<0.000000e+00> : vector<32x1xf32>
    %72 = tpu.matmul %71, %70, %cst_30 {dimension_numbers = #tpu.dot_dimension_numbers<[1], [0], [0], [1], [0, 0, 1, 1], [], []>} : vector<32x2xf32>, vector<2x1xf32>, vector<32x1xf32> -> vector<32x1xf32>
    %c0_31 = arith.constant 0 : index
    %c0_32 = arith.constant 0 : index
    %73 = vector.load %arg12[%c0_31, %c0_32] : memref<32x1xf32, #tpu.memory_space<vmem>>, vector<32x1xf32>
    %74 = arith.addf %72, %73 : vector<32x1xf32>
    %75 = arith.negf %74 : vector<32x1xf32>
    %76 = math.exp %75 : vector<32x1xf32>
    %cst_33 = arith.constant 1.000000e+00 : f32
    %77 = vector.broadcast %cst_33 : f32 to vector<32x1xf32>
    %78 = arith.addf %77, %76 : vector<32x1xf32>
    %79 = arith.divf %77, %78 : vector<32x1xf32>
    %80 = vector.broadcast %79 : vector<32x1xf32> to vector<32x256xf32>
    %81 = arith.mulf %80, %58 : vector<32x256xf32>
    %82 = arith.addf %81, %3 : vector<32x256xf32>
    %cst_34 = arith.constant 0.000000e+00 : f32
    %83 = vector.broadcast %cst_34 : f32 to vector<32x256xf32>
    %84 = arith.maximumf %82, %83 : vector<32x256xf32>
    %c0_35 = arith.constant 0 : index
    %c0_36 = arith.constant 0 : index
    %c0_37 = arith.constant 0 : index
    %85 = vector.load %arg13[%c0_35, %c0_36, %c0_37] : memref<2x32x256xf32, #tpu.memory_space<vmem>>, vector<1x32x256xf32>
    %86 = vector.shape_cast %85 : vector<1x32x256xf32> to vector<32x256xf32>
    %87 = vector.shape_cast %84 : vector<32x256xf32> to vector<1x32x256xf32>
    tpu.vector_store %arg13[%c0_35, %c0_36, %c0_37], %87 {strides = array<i32>} : memref<2x32x256xf32, #tpu.memory_space<vmem>>, vector<1x32x256xf32>,
    %c1 = arith.constant 1 : index
    %c0_38 = arith.constant 0 : index
    %c0_39 = arith.constant 0 : index
    %88 = vector.load %arg1[%c1, %c0_38, %c0_39] : memref<2x32x256xf32, #tpu.memory_space<vmem>>, vector<1x32x256xf32>
    %89 = vector.shape_cast %88 : vector<1x32x256xf32> to vector<32x256xf32>
    %c0_40 = arith.constant 0 : index
    %c0_41 = arith.constant 0 : index
    %90 = vector.load %arg3[%c0_40, %c0_41] : memref<8x32xbf16, #tpu.memory_space<vmem>>, vector<8x32xbf16>
    %91 = arith.truncf %89 : vector<32x256xf32> to vector<32x256xbf16>
    %cst_42 = arith.constant dense<0.000000e+00> : vector<8x256xf32>
    %92 = tpu.matmul %90, %91, %cst_42 {dimension_numbers = #tpu.dot_dimension_numbers<[1], [0], [0], [1], [0, 0, 1, 1], [], []>} : vector<8x32xbf16>, vector<32x256xbf16>, vector<8x256xf32> -> vector<8x256xf32>
    %c0_43 = arith.constant 0 : index
    %c0_44 = arith.constant 0 : index
    %93 = vector.load %arg4[%c0_43, %c0_44] : memref<8x1xf32, #tpu.memory_space<vmem>>, vector<8x1xf32>
    %94 = vector.broadcast %93 : vector<8x1xf32> to vector<8x256xf32>
    %95 = arith.addf %92, %94 : vector<8x256xf32>
    %cst_45 = arith.constant 0.000000e+00 : f32
    %96 = vector.broadcast %cst_45 : f32 to vector<8x256xf32>
    %97 = arith.maximumf %95, %96 : vector<8x256xf32>
    %c17_i32_46 = arith.constant 17 : i32
    %98 = tpu.dynamic_rotate %97 by %c17_i32_46 dim 1 : vector<8x256xf32>, i32 -> vector<8x256xf32>
    %99 = vector.extract_strided_slice %0 {offsets = [0, 0], sizes = [1, 256], strides = [1, 1]} : vector<9x256xf32> to vector<1x256xf32>
    %100 = vector.broadcast %99 : vector<1x256xf32> to vector<8x256xf32>
    %101 = arith.mulf %98, %100 : vector<8x256xf32>
    %c16_i32_47 = arith.constant 16 : i32
    %102 = tpu.dynamic_rotate %97 by %c16_i32_47 dim 1 : vector<8x256xf32>, i32 -> vector<8x256xf32>
    %103 = vector.extract_strided_slice %0 {offsets = [1, 0], sizes = [1, 256], strides = [1, 1]} : vector<9x256xf32> to vector<1x256xf32>
    %104 = vector.broadcast %103 : vector<1x256xf32> to vector<8x256xf32>
    %105 = arith.mulf %102, %104 : vector<8x256xf32>
    %c15_i32_48 = arith.constant 15 : i32
    %106 = tpu.dynamic_rotate %97 by %c15_i32_48 dim 1 : vector<8x256xf32>, i32 -> vector<8x256xf32>
    %107 = vector.extract_strided_slice %0 {offsets = [2, 0], sizes = [1, 256], strides = [1, 1]} : vector<9x256xf32> to vector<1x256xf32>
    %108 = vector.broadcast %107 : vector<1x256xf32> to vector<8x256xf32>
    %109 = arith.mulf %106, %108 : vector<8x256xf32>
    %c1_i32_49 = arith.constant 1 : i32
    %110 = tpu.dynamic_rotate %97 by %c1_i32_49 dim 1 : vector<8x256xf32>, i32 -> vector<8x256xf32>
    %111 = vector.extract_strided_slice %0 {offsets = [3, 0], sizes = [1, 256], strides = [1, 1]} : vector<9x256xf32> to vector<1x256xf32>
    %112 = vector.broadcast %111 : vector<1x256xf32> to vector<8x256xf32>
    %113 = arith.mulf %110, %112 : vector<8x256xf32>
    %c255_i32_50 = arith.constant 255 : i32
    %114 = tpu.dynamic_rotate %97 by %c255_i32_50 dim 1 : vector<8x256xf32>, i32 -> vector<8x256xf32>
    %115 = vector.extract_strided_slice %0 {offsets = [5, 0], sizes = [1, 256], strides = [1, 1]} : vector<9x256xf32> to vector<1x256xf32>
    %116 = vector.broadcast %115 : vector<1x256xf32> to vector<8x256xf32>
    %117 = arith.mulf %114, %116 : vector<8x256xf32>
    %c241_i32_51 = arith.constant 241 : i32
    %118 = tpu.dynamic_rotate %97 by %c241_i32_51 dim 1 : vector<8x256xf32>, i32 -> vector<8x256xf32>
    %119 = vector.extract_strided_slice %0 {offsets = [6, 0], sizes = [1, 256], strides = [1, 1]} : vector<9x256xf32> to vector<1x256xf32>
    %120 = vector.broadcast %119 : vector<1x256xf32> to vector<8x256xf32>
    %121 = arith.mulf %118, %120 : vector<8x256xf32>
    %c240_i32_52 = arith.constant 240 : i32
    %122 = tpu.dynamic_rotate %97 by %c240_i32_52 dim 1 : vector<8x256xf32>, i32 -> vector<8x256xf32>
    %123 = vector.extract_strided_slice %0 {offsets = [7, 0], sizes = [1, 256], strides = [1, 1]} : vector<9x256xf32> to vector<1x256xf32>
    %124 = vector.broadcast %123 : vector<1x256xf32> to vector<8x256xf32>
    %125 = arith.mulf %122, %124 : vector<8x256xf32>
    %c239_i32_53 = arith.constant 239 : i32
    %126 = tpu.dynamic_rotate %97 by %c239_i32_53 dim 1 : vector<8x256xf32>, i32 -> vector<8x256xf32>
    %127 = vector.extract_strided_slice %0 {offsets = [8, 0], sizes = [1, 256], strides = [1, 1]} : vector<9x256xf32> to vector<1x256xf32>
    %128 = vector.broadcast %127 : vector<1x256xf32> to vector<8x256xf32>
    %129 = arith.mulf %126, %128 : vector<8x256xf32>
    %130 = tpu.concatenate %101, %105, %109, %113, %97, %117, %121, %125, %129 in 0 : vector<8x256xf32>, vector<8x256xf32>, vector<8x256xf32>, vector<8x256xf32>, vector<8x256xf32>, vector<8x256xf32>, vector<8x256xf32>, vector<8x256xf32>, vector<8x256xf32> -> vector<72x256xf32>
    %131 = arith.truncf %130 : vector<72x256xf32> to vector<72x256xbf16>
    %c0_54 = arith.constant 0 : index
    %c0_55 = arith.constant 0 : index
    %132 = vector.load %arg5[%c0_54, %c0_55] : memref<8x72xbf16, #tpu.memory_space<vmem>>, vector<8x72xbf16>
    %cst_56 = arith.constant dense<0.000000e+00> : vector<8x256xf32>
    %133 = tpu.matmul %132, %131, %cst_56 {dimension_numbers = #tpu.dot_dimension_numbers<[1], [0], [0], [1], [0, 0, 1, 1], [], []>} : vector<8x72xbf16>, vector<72x256xbf16>, vector<8x256xf32> -> vector<8x256xf32>
    %c0_57 = arith.constant 0 : index
    %c0_58 = arith.constant 0 : index
    %134 = vector.load %arg6[%c0_57, %c0_58] : memref<8x1xf32, #tpu.memory_space<vmem>>, vector<8x1xf32>
    %135 = vector.broadcast %134 : vector<8x1xf32> to vector<8x256xf32>
    %136 = arith.addf %133, %135 : vector<8x256xf32>
    %cst_59 = arith.constant 0.000000e+00 : f32
    %137 = vector.broadcast %cst_59 : f32 to vector<8x256xf32>
    %138 = arith.maximumf %136, %137 : vector<8x256xf32>
    %c0_60 = arith.constant 0 : index
    %c0_61 = arith.constant 0 : index
    %139 = vector.load %arg7[%c0_60, %c0_61] : memref<32x8xbf16, #tpu.memory_space<vmem>>, vector<32x8xbf16>
    %140 = arith.truncf %138 : vector<8x256xf32> to vector<8x256xbf16>
    %cst_62 = arith.constant dense<0.000000e+00> : vector<32x256xf32>
    %141 = tpu.matmul %139, %140, %cst_62 {dimension_numbers = #tpu.dot_dimension_numbers<[1], [0], [0], [1], [0, 0, 1, 1], [], []>} : vector<32x8xbf16>, vector<8x256xbf16>, vector<32x256xf32> -> vector<32x256xf32>
    %c0_63 = arith.constant 0 : index
    %c0_64 = arith.constant 0 : index
    %142 = vector.load %arg8[%c0_63, %c0_64] : memref<32x1xf32, #tpu.memory_space<vmem>>, vector<32x1xf32>
    %143 = vector.broadcast %142 : vector<32x1xf32> to vector<32x256xf32>
    %144 = arith.addf %141, %143 : vector<32x256xf32>
    %145 = vector.broadcast %1 : vector<1x256xf32> to vector<32x256xf32>
    %146 = arith.mulf %144, %145 : vector<32x256xf32>
    %cst_65 = arith.constant dense<0.000000e+00> : vector<32xf32>
    %147 = vector.multi_reduction <add>, %146, %cst_65 [1] : vector<32x256xf32> to vector<32xf32>
    %148 = vector.shape_cast %147 : vector<32xf32> to vector<32x1xf32>
    %cst_66 = arith.constant 3.906250e-03 : f32
    %149 = vector.broadcast %cst_66 : f32 to vector<32x1xf32>
    %150 = arith.mulf %148, %149 : vector<32x1xf32>
    %c0_67 = arith.constant 0 : index
    %c0_68 = arith.constant 0 : index
    %151 = vector.load %arg9[%c0_67, %c0_68] : memref<2x32xf32, #tpu.memory_space<vmem>>, vector<2x32xf32>
    %cst_69 = arith.constant dense<0.000000e+00> : vector<2x1xf32>
    %152 = tpu.matmul %151, %150, %cst_69 {dimension_numbers = #tpu.dot_dimension_numbers<[1], [0], [0], [1], [0, 0, 1, 1], [], []>} : vector<2x32xf32>, vector<32x1xf32>, vector<2x1xf32> -> vector<2x1xf32>
    %c0_70 = arith.constant 0 : index
    %c0_71 = arith.constant 0 : index
    %153 = vector.load %arg10[%c0_70, %c0_71] : memref<2x1xf32, #tpu.memory_space<vmem>>, vector<2x1xf32>
    %154 = arith.addf %152, %153 : vector<2x1xf32>
    %cst_72 = arith.constant 0.000000e+00 : f32
    %155 = vector.broadcast %cst_72 : f32 to vector<2x1xf32>
    %156 = arith.maximumf %154, %155 : vector<2x1xf32>
    %c0_73 = arith.constant 0 : index
    %c0_74 = arith.constant 0 : index
    %157 = vector.load %arg11[%c0_73, %c0_74] : memref<32x2xf32, #tpu.memory_space<vmem>>, vector<32x2xf32>
    %cst_75 = arith.constant dense<0.000000e+00> : vector<32x1xf32>
    %158 = tpu.matmul %157, %156, %cst_75 {dimension_numbers = #tpu.dot_dimension_numbers<[1], [0], [0], [1], [0, 0, 1, 1], [], []>} : vector<32x2xf32>, vector<2x1xf32>, vector<32x1xf32> -> vector<32x1xf32>
    %c0_76 = arith.constant 0 : index
    %c0_77 = arith.constant 0 : index
    %159 = vector.load %arg12[%c0_76, %c0_77] : memref<32x1xf32, #tpu.memory_space<vmem>>, vector<32x1xf32>
    %160 = arith.addf %158, %159 : vector<32x1xf32>
    %161 = arith.negf %160 : vector<32x1xf32>
    %162 = math.exp %161 : vector<32x1xf32>
    %cst_78 = arith.constant 1.000000e+00 : f32
    %163 = vector.broadcast %cst_78 : f32 to vector<32x1xf32>
    %164 = arith.addf %163, %162 : vector<32x1xf32>
    %165 = arith.divf %163, %164 : vector<32x1xf32>
    %166 = vector.broadcast %165 : vector<32x1xf32> to vector<32x256xf32>
    %167 = arith.mulf %166, %144 : vector<32x256xf32>
    %168 = arith.addf %167, %89 : vector<32x256xf32>
    %cst_79 = arith.constant 0.000000e+00 : f32
    %169 = vector.broadcast %cst_79 : f32 to vector<32x256xf32>
    %170 = arith.maximumf %168, %169 : vector<32x256xf32>
    %c1_80 = arith.constant 1 : index
    %c0_81 = arith.constant 0 : index
    %c0_82 = arith.constant 0 : index
    %171 = vector.load %arg13[%c1_80, %c0_81, %c0_82] : memref<2x32x256xf32, #tpu.memory_space<vmem>>, vector<1x32x256xf32>
    %172 = vector.shape_cast %171 : vector<1x32x256xf32> to vector<32x256xf32>
    %173 = vector.shape_cast %170 : vector<32x256xf32> to vector<1x32x256xf32>
    tpu.vector_store %arg13[%c1_80, %c0_81, %c0_82], %173 {strides = array<i32>} : memref<2x32x256xf32, #tpu.memory_space<vmem>>, vector<1x32x256xf32>,
    return
  }
  func.func @transform_0(%arg0: i32) -> (i32, i32, i32) {
    %c0_i32 = arith.constant 0 : i32
    %c0_i32_0 = arith.constant 0 : i32
    %c0_i32_1 = arith.constant 0 : i32
    return %arg0, %c0_i32, %c0_i32_0 : i32, i32, i32
  }
  func.func @transform_1(%arg0: i32) -> (i32, i32) {
    %c0_i32 = arith.constant 0 : i32
    %c0_i32_0 = arith.constant 0 : i32
    %c0_i32_1 = arith.constant 0 : i32
    return %c0_i32, %c0_i32_0 : i32, i32
  }
  func.func @transform_2(%arg0: i32) -> (i32, i32) {
    %c0_i32 = arith.constant 0 : i32
    %c0_i32_0 = arith.constant 0 : i32
    %c0_i32_1 = arith.constant 0 : i32
    return %c0_i32, %c0_i32_0 : i32, i32
  }
  func.func @transform_3(%arg0: i32) -> (i32, i32) {
    %c0_i32 = arith.constant 0 : i32
    %c0_i32_0 = arith.constant 0 : i32
    %c0_i32_1 = arith.constant 0 : i32
    return %c0_i32, %c0_i32_0 : i32, i32
  }
  func.func @transform_4(%arg0: i32) -> (i32, i32) {
    %c0_i32 = arith.constant 0 : i32
    %c0_i32_0 = arith.constant 0 : i32
    %c0_i32_1 = arith.constant 0 : i32
    return %c0_i32, %c0_i32_0 : i32, i32
  }
  func.func @transform_5(%arg0: i32) -> (i32, i32) {
    %c0_i32 = arith.constant 0 : i32
    %c0_i32_0 = arith.constant 0 : i32
    %c0_i32_1 = arith.constant 0 : i32
    return %c0_i32, %c0_i32_0 : i32, i32
  }
  func.func @transform_6(%arg0: i32) -> (i32, i32) {
    %c0_i32 = arith.constant 0 : i32
    %c0_i32_0 = arith.constant 0 : i32
    %c0_i32_1 = arith.constant 0 : i32
    return %c0_i32, %c0_i32_0 : i32, i32
  }
  func.func @transform_7(%arg0: i32) -> (i32, i32) {
    %c0_i32 = arith.constant 0 : i32
    %c0_i32_0 = arith.constant 0 : i32
    %c0_i32_1 = arith.constant 0 : i32
    return %c0_i32, %c0_i32_0 : i32, i32
  }
  func.func @transform_8(%arg0: i32) -> (i32, i32) {
    %c0_i32 = arith.constant 0 : i32
    %c0_i32_0 = arith.constant 0 : i32
    %c0_i32_1 = arith.constant 0 : i32
    return %c0_i32, %c0_i32_0 : i32, i32
  }
  func.func @transform_9(%arg0: i32) -> (i32, i32) {
    %c0_i32 = arith.constant 0 : i32
    %c0_i32_0 = arith.constant 0 : i32
    %c0_i32_1 = arith.constant 0 : i32
    return %c0_i32, %c0_i32_0 : i32, i32
  }
  func.func @transform_10(%arg0: i32) -> (i32, i32) {
    %c0_i32 = arith.constant 0 : i32
    %c0_i32_0 = arith.constant 0 : i32
    %c0_i32_1 = arith.constant 0 : i32
    return %c0_i32, %c0_i32_0 : i32, i32
  }
  func.func @transform_11(%arg0: i32) -> (i32, i32) {
    %c0_i32 = arith.constant 0 : i32
    %c0_i32_0 = arith.constant 0 : i32
    %c0_i32_1 = arith.constant 0 : i32
    return %c0_i32, %c0_i32_0 : i32, i32
  }
  func.func @transform_12(%arg0: i32) -> (i32, i32, i32) {
    %c0_i32 = arith.constant 0 : i32
    %c0_i32_0 = arith.constant 0 : i32
    %c0_i32_1 = arith.constant 0 : i32
    return %arg0, %c0_i32, %c0_i32_0 : i32, i32, i32
  }
}

</mosaic_0001>

<bundles_post_ra>
// kernel: bottleneck_forward.1
= control target key start
LH: loop header
LB: loop body
LE: loop exit
PB: predicated region body
PF: predicated region fallthrough
CT: control target
= control target key end

     0   :  { %v2250_v3 = vmov 0   ;;  %vm65_vm0 = vcmask 261120   ;;  %s1484_s23 = smov 111   ;;  %s1485_s24 = smov 112   ;;  %v116_v29 = vlaneseq  ;;  %vm271_vm5 = vcmask 1043456   ;;  %s2237_s0 = inlined_call_operand.vmem [shape: f32[2,32,256], index: 0, kind: input, shape index: {}, may-alias: {0,12}]   ;;  %s2238_s3 = inlined_call_operand.vmem [shape: f32[8,1], index: 3, kind: input, shape index: {}]   ;;  %s2239_s2 = inlined_call_operand.vmem [shape: bf16[8,32], index: 2, kind: input, shape index: {}]   ;;  %s2240_s7 = inlined_call_operand.vmem [shape: f32[32,1], index: 7, kind: input, shape index: {}]   ;;  %s2241_s5 = inlined_call_operand.vmem [shape: f32[8,1], index: 5, kind: input, shape index: {}]   ;;  %s2242_s1 = inlined_call_operand.vmem [shape: f32[9,256], index: 1, kind: input, shape index: {}]   ;;  %s2243_s4 = inlined_call_operand.vmem [shape: bf16[8,72], index: 4, kind: input, shape index: {}]   ;;  %s2244_s6 = inlined_call_operand.vmem [shape: bf16[32,8], index: 6, kind: input, shape index: {}]   ;;  %s2245_s8 = inlined_call_operand.vmem [shape: f32[2,32], index: 8, kind: input, shape index: {}]   ;;  %s2246_s9 = inlined_call_operand.vmem [shape: f32[2,1], index: 9, kind: input, shape index: {}]   ;;  %s2247_s10 = inlined_call_operand.vmem [shape: f32[32,2], index: 10, kind: input, shape index: {}]   ;;  %s2248_s11 = inlined_call_operand.vmem [shape: f32[32,1], index: 11, kind: input, shape index: {}]   ;;  %s2249_s12 = inlined_call_operand.vmem [shape: f32[2,32,256], index: 12, kind: output, shape index: {}, may-alias: {0,12}]  }
   0x1   :  { %v51_v0 = vld [vmem:[%s2237_s0 + $0x28] sm:$0xff]  ;;  %v53_v1 = vld [vmem:[%s2237_s0 + $0x38] sm:$0xff]  ;;  %v50_v2 = vld [vmem:[%s2237_s0 + $0x20] sm:$0xff]  ;;  %101 = vmatprep.mubr.bf16.mxu0 %v2250_v3  ;;  %1437 = vset.pattern.permute.xlu0 %v2250_v3  ;;  %s1486_s25 = smov 127   ;;  %s1487_s26 = smov 15   ;;  %vm267_vm10 = vcmask 588800  }
   0x2   :  { %v58_v4 = vpack.c.bf16 %v53_v1, %v51_v0  ;;  %v52_v5 = vld [vmem:[%s2237_s0 + $0x30] sm:$0xff]  ;;  %v47_v6 = vld [vmem:[%s2237_s0 + $0x8] sm:$0xff]  ;;  %v49_v7 = vld [vmem:[%s2237_s0 + $0x18] sm:$0xff]  ;;  %310 = vmatprep.mubr.bf16.mxu1 %v2250_v3  ;;  %1438 = vset.pattern.permute.xlu1 %v2250_v3  ;;  %s1488_s27 = smov 1   ;;  %s1489_s28 = smov 17   ;;  %v1666_v32 = vshrl.u32 %v116_v29, 7 }
   0x3   :  { %v57_v8 = vpack.c.bf16 %v52_v5, %v50_v2  ;;  %v56_v9 = vpack.c.bf16 %v49_v7, %v47_v6  ;;  %v1583_v10 = vld [vmem:[%s2237_s0] sm:$0xff]  ;;  %v48_v11 = vld [vmem:[%s2237_s0 + $0x10] sm:$0xff]  ;;  %s1490_s29 = smov 16   ;;  %v1639_v24 = vld [vmem:[%s2240_s7 + $0x18] sm:$0xff]  ;;  %v1668_v35 = vand.u32 127, %v116_v29  ;;  %vm361_vm11 = vcmask 64512  }
   0x4   :  { %81 = vmatprep.subr.bf16.mxu0 %v58_v4  ;;  %v1591_v12 = vld [vmem:[%s2238_s3] sm:$0xff]  ;;  %v55_v13 = vpack.c.bf16 %v48_v11, %v1583_v10  ;;  %s1483_s3 = smov 113   ;;  %v1650_v26 = vld [vmem:[%s2240_s7 + $0x8] sm:$0xff]  ;;  %v1656_v27 = vld [vmem:[%s2240_s7 + $0x10] sm:$0xff]  ;;  %v225_v36 = vsub.s32 7, %v1666_v32  ;;  %v208_v37 = vsub.s32 6, %v1666_v32 }
   0x5   :  { %82 = vmatpush1.bf16.msra.mxu0 %v57_v8  ;;  %62 = vperm.xlu0 %1437, %v1591_v12   ;;  %v54_v14 = vld [vmem:[%s2239_s2] sm:$0xf]  ;;  %vm220_vm1 = vcmp.lt.s32.totalorder %v1668_v35, 112  ;;  %v191_v41 = vsub.s32 5, %v1666_v32  ;;  %v1682_v42 = vld [vmem:[%s2242_s1 + $0x8] sm:$0xff]  ;;  %vm203_vm2 = vcmp.lt.s32.totalorder %v1668_v35, 113 }
   0x6   :  { %83 = vmatprep.subr.bf16.mxu0 %v56_v9  ;;  %v1645_v25 = vld [vmem:[%s2241_s5] sm:$0xff]  ;;  %v1686_v43 = vrot.slane %v1682_v42, %v225_v36  ;;  %vm237_vm3 = vcmp.lt.s32.totalorder %v1668_v35, 111  ;;  %v1697_v46 = vld [vmem:[%s2242_s1 + $0x10] ss:$0 sm:$0xff]  ;;  %v1702_v47 = vld [vmem:[%s2242_s1 + $0x18] ss:$0 sm:$0xff]  ;;  %v1705_v48 = vrot.slane %v1682_v42, %v208_v37 }
   0x7   :  { %v1663_v28 = vld [vmem:[%s2240_s7] sm:$0xff]  ;;  %vm186_vm4 = vcmp.lt.s32.totalorder %v1668_v35, 127  ;;  %v1712_v51 = vrot.slane %v1682_v42, %v191_v41  ;;  %v174_v56 = vsub.s32 3, %v1666_v32  ;;  %v157_v63 = vsub.s32 2, %v1666_v32 }
   0x8   :  { %v1675_v38 = vld [vmem:[%s2242_s1] sm:$0xff]  ;;  %vm152_vm6 = vcmp.lt.s32.totalorder %v1668_v35, 15  ;;  %vm169_vm7 = vcmp.lt.s32.totalorder %v1668_v35, 1  ;;  %vm118_vm8 = vcmp.lt.s32.totalorder %v1668_v35, 17  ;;  %vm135_vm9 = vcmp.lt.s32.totalorder %v1668_v35, 16 }
   0x9   :  { %84 = vmatpush1.bf16.msra.mxu0 %v55_v13  ;;  %v1690_v44 = vrot.slane %v1675_v38, %v208_v37  ;;  %v1708_v49 = vrot.slane %v1675_v38, %v225_v36  ;;  %v1727_v61 = vrot.slane %v1675_v38, %v191_v41  ;;  %v1739_v8 = vrot.slane %v1682_v42, %v174_v56 }
   0xa   :  { %v140_v37 = vsub.s32 1, %v1666_v32  ;;  %vm1492_vm12 = vmmov 0   ;;  %vm556_vm13 = vcmask 1041408   ;;  %vm543_vm14 = vcmask 15360  }
   0xc   :  { %1314 = vmatmul.mubr.msk.bf16.vlgmr.msra.gmra.mxu0 %vm65_vm0, %v54_v14 }
   0xd   :  { %406 = vmatprep.mubr.bf16.mxu0 %v2250_v3 }
  0x80   :  { %v63_v15 = vpop.permute.xlu0 %62 }
  0xcc   :  { %v103_v16 = vpop.f32.mrf.mxu0 }
  0xcd   :  { %v104_v17 = vadd.f32 %v103_v16, %v63_v15  ;;  %v1748_v16 = vrot.slane %v1682_v42, %v157_v63 }
  0xce   :  { %v105_v18 = vpop.f32.mrf.mxu0 }
  0xcf   :  { %v1600_v19 = vmax.f32 %v104_v17, 0.0  ;;  %v106_v20 = vadd.f32 %v105_v18, %v63_v15  ;;  %v1751_v18 = vrot.slane %v1675_v38, %v174_v56  ;;  %v1781_v56 = vrot.slane %v1675_v38, %v140_v37 }
  0xd0   :  { %v107_v21 = vpop.f32.mrf.mxu0 }
  0xd1   :  { %199 = vrot.lane.b32.xlu1 %v1600_v19, %s1483_s3  ;;  %233 = vrot.lane.b32.xlu0 %v1600_v19, %s1484_s23  ;;  %v1606_v23 = vmax.f32 %v106_v20, 0.0  ;;  %v123_v21 = vsub.s32 0, %v1666_v32 }
  0xd2   :  { %v108_v22 = vpop.f32.mrf.mxu0 }
  0xd5   :  { %216 = vrot.lane.b32.xlu1 %v1600_v19, %s1485_s24  ;;  %201 = vrot.lane.b32.xlu0 %v1606_v23, %s1483_s3 }
  0xd9   :  { %182 = vrot.lane.b32.xlu1 %v1600_v19, %s1486_s25  ;;  %218 = vrot.lane.b32.xlu0 %v1606_v23, %s1485_s24 }
  0xdd   :  { %235 = vrot.lane.b32.xlu1 %v1606_v23, %s1484_s23  ;;  %184 = vrot.lane.b32.xlu0 %v1606_v23, %s1486_s25 }
  0xe1   :  { %148 = vrot.lane.b32.xlu1 %v1600_v19, %s1487_s26  ;;  %150 = vrot.lane.b32.xlu0 %v1606_v23, %s1487_s26 }
  0xe5   :  { %165 = vrot.lane.b32.xlu1 %v1600_v19, %s1488_s27  ;;  %167 = vrot.lane.b32.xlu0 %v1606_v23, %s1488_s27 }
  0xe9   :  { %112 = vrot.lane.b32.xlu1 %v1600_v19, %s1489_s28  ;;  %114 = vrot.lane.b32.xlu0 %v1606_v23, %s1489_s28 }
  0xed   :  { %131 = vrot.lane.b32.xlu1 %v1600_v19, %s1490_s29  ;;  %133 = vrot.lane.b32.xlu0 %v1606_v23, %s1490_s29 }
  0xf1   :  { %348 = vperm.xlu0 %1437, %v1639_v24   ;;  %264 = vperm.xlu1 %1438, %v1645_v25  }
  0xf5   :  { %338 = vperm.xlu0 %1437, %v1650_v26   ;;  %343 = vperm.xlu1 %1438, %v1656_v27  }
  0xf9   :  { %333 = vperm.xlu1 %1438, %v1663_v28  }
 0x143   :  { %v200_v30 = vpop.permute.xlu1 %199  ;;  %v234_v31 = vpop.permute.xlu0 %233 }
 0x147   :  { %v217_v33 = vpop.permute.xlu1 %216  ;;  %v202_v34 = vpop.permute.xlu0 %201 }
 0x148   :  { %v205_v53 = vsel %vm203_vm2, %v202_v34, %v200_v30  ;;  %v204_v0 = vsel %vm203_vm2, %v200_v30, %v202_v34 }
 0x149   :  { %v215_v1 = vmul.f32 %v1705_v48, %v205_v53  ;;  %v214_v15 = vmul.f32 %v1690_v44, %v204_v0  ;;  %v1776_v53 = vrot.slane %v1682_v42, %v123_v21 }
 0x14b   :  { %v183_v39 = vpop.permute.xlu1 %182  ;;  %v219_v40 = vpop.permute.xlu0 %218 }
 0x14c   :  { %v222_v45 = vsel %vm220_vm1, %v219_v40, %v217_v33  ;;  %v221_v57 = vsel %vm220_vm1, %v217_v33, %v219_v40 }
 0x14d   :  { %v232_v58 = vmul.f32 %v1686_v43, %v222_v45  ;;  %v231_v7 = vmul.f32 %v1708_v49, %v221_v57  ;;  %v1784_v57 = vrot.slane %v1682_v42, %v140_v37  ;;  %v1440_v37 = vld [vmem:[%s2244_s6 + $0x8] sm:$0xff]  }
 0x14f   :  { %v236_v50 = vpop.permute.xlu1 %235  ;;  %v185_v52 = vpop.permute.xlu0 %184  ;;  %v257_v14 = vpack.c.bf16 %v232_v58, %v215_v1 }
 0x150   :  { %v238_v54 = vsel %vm237_vm3, %v234_v31, %v236_v50  ;;  %v239_v55 = vsel %vm237_vm3, %v236_v50, %v234_v31  ;;  %v188_v62 = vsel %vm186_vm4, %v185_v52, %v183_v39  ;;  %v187_v9 = vsel %vm186_vm4, %v183_v39, %v185_v52 }
 0x151   :  { %v248_v59 = vmul.f32 %v1697_v46, %v238_v54  ;;  %v249_v60 = vmul.f32 %v1702_v47, %v239_v55  ;;  %v198_v11 = vmul.f32 %v1712_v51, %v188_v62  ;;  %v197_v22 = vmul.f32 %v1727_v61, %v187_v9 }
 0x152   :  { %v256_v31 = vpack.c.bf16 %v231_v7, %v214_v15  ;;  %v1765_v39 = vrot.slane %v1675_v38, %v157_v63 }
 0x153   :  { %v149_v2 = vpop.permute.xlu1 %148  ;;  %v151_v4 = vpop.permute.xlu0 %150  ;;  %v259_v5 = vpack.c.bf16 %v249_v60, %v249_v60  ;;  %v258_v6 = vpack.c.bf16 %v248_v59, %v248_v59  ;;  %v255_v36 = vpack.c.bf16 %v198_v11, %v1606_v23  ;;  %v1773_v23 = vrot.slane %v1675_v38, %v123_v21  ;;  %v260_v11 = vld [vmem:[%s2243_s4] sm:$0xf] }
 0x154   :  { %v153_v29 = vsel %vm152_vm6, %v149_v2, %v151_v4  ;;  %v154_v40 = vsel %vm152_vm6, %v151_v4, %v149_v2  ;;  %v254_v54 = vpack.c.bf16 %v197_v22, %v1600_v19 }
 0x155   :  { %1317 = vmatprep.subr.msk.bf16.mxu1 %vm271_vm5, %v259_v5  ;;  %v273_v13 = vsel %vm271_vm5, %v258_v6, 0  ;;  %v164_v41 = vmul.f32 %v1748_v16, %v153_v29  ;;  %v163_v58 = vmul.f32 %v1765_v39, %v154_v40 }
 0x156   :  { %285 = vmatpush1.bf16.msra.mxu1 %v273_v13 }
 0x157   :  { %v166_v17 = vpop.permute.xlu1 %165  ;;  %286 = vmatprep.subr.bf16.mxu1 %v257_v14  ;;  %v168_v20 = vpop.permute.xlu0 %167 }
 0x158   :  { %v170_v30 = vsel %vm169_vm7, %v166_v17, %v168_v20  ;;  %v171_v33 = vsel %vm169_vm7, %v168_v20, %v166_v17 }
 0x159   :  { %v181_v34 = vmul.f32 %v1739_v8, %v170_v30  ;;  %v180_v52 = vmul.f32 %v1751_v18, %v171_v33 }
 0x15a   :  { %287 = vmatpush1.bf16.msra.mxu1 %v256_v31 }
 0x15b   :  { %v113_v45 = vpop.permute.xlu1 %112  ;;  %288 = vmatprep.subr.bf16.mxu1 %v255_v36  ;;  %v115_v50 = vpop.permute.xlu0 %114  ;;  %v253_v55 = vpack.c.bf16 %v181_v34, %v164_v41  ;;  %v252_v1 = vpack.c.bf16 %v180_v52, %v163_v58  ;;  %v1439_v36 = vld [vmem:[%s2244_s6] sm:$0xff]  }
 0x15c   :  { %v119_v59 = vsel %vm118_vm8, %v113_v45, %v115_v50  ;;  %v120_v60 = vsel %vm118_vm8, %v115_v50, %v113_v45 }
 0x15d   :  { %v129_v2 = vmul.f32 %v1773_v23, %v120_v60  ;;  %v130_v4 = vmul.f32 %v1776_v53, %v119_v59 }
 0x15e   :  { %289 = vmatpush1.bf16.msra.mxu1 %v254_v54  ;;  %v429_v54 = vsub.s32 4, %v1666_v32 }
 0x15f   :  { %v132_v62 = vpop.permute.xlu1 %131  ;;  %290 = vmatprep.subr.bf16.mxu1 %v253_v55  ;;  %v134_v19 = vpop.permute.xlu0 %133 }
 0x160   :  { %v136_v63 = vsel %vm135_vm9, %v132_v62, %v134_v19  ;;  %v137_v0 = vsel %vm135_vm9, %v134_v19, %v132_v62  ;;  %v1818_v62 = vrot.slane %v1675_v38, %v429_v54  ;;  %v1821_v19 = vrot.slane %v1682_v42, %v429_v54  ;;  %v1877_v54 = vld [vmem:[%s2237_s0 + $0x70] sm:$0xff] }
 0x161   :  { %v146_v5 = vmul.f32 %v1781_v56, %v137_v0  ;;  %v147_v6 = vmul.f32 %v1784_v57, %v136_v63 }
 0x162   :  { %291 = vmatpush1.bf16.msra.mxu1 %v252_v1 }
 0x163   :  { %v251_v7 = vpack.c.bf16 %v147_v6, %v130_v4  ;;  %v250_v9 = vpack.c.bf16 %v146_v5, %v129_v2 }
 0x165   :  { %292 = vmatprep.subr.bf16.mxu1 %v251_v7 }
 0x166   :  { %293 = vmatpush1.bf16.msra.mxu1 %v250_v9 }
 0x169   :  { %1318 = vmatmul.mubr.msk.bf16.vlgmr.msra.gmra.mxu1 %vm267_vm10, %v260_v11 }
 0x16c   :  { %v265_v13 = vpop.permute.xlu1 %264  ;;  %v349_v52 = vpop.permute.xlu0 %348 }
 0x170   :  { %v344_v55 = vpop.permute.xlu1 %343  ;;  %v339_v4 = vpop.permute.xlu0 %338 }
 0x229   :  { %v312_v14 = vpop.f32.mrf.mxu1 }
 0x22a   :  { %v313_v15 = vadd.f32 %v312_v14, %v265_v13 }
 0x22b   :  { %v314_v17 = vpop.f32.mrf.mxu1 }
 0x22c   :  { %v319_v20 = vmax.f32 %v313_v15, 0.0  ;;  %v315_v21 = vadd.f32 %v314_v17, %v265_v13  ;;  %v334_v13 = vpop.permute.xlu1 %333 }
 0x22d   :  { %v316_v22 = vpop.f32.mrf.mxu1 }
 0x22e   :  { %v325_v29 = vpack.c.bf16 %v319_v20, %v319_v20  ;;  %v320_v30 = vmax.f32 %v315_v21, 0.0 }
 0x22f   :  { %v317_v31 = vpop.f32.mrf.mxu1 }
 0x230   :  { %v326_v33 = vpack.c.bf16 %v320_v30, %v320_v30  ;;  %v369_v34 = vsel %vm271_vm5, %v325_v29, 0 }
 0x232   :  { %1321 = vmatprep.subr.msk.bf16.mxu0 %vm271_vm5, %v326_v33  ;;  %v1491_v33 = vmov 0.0  }
 0x233   :  { %389 = vmatpush1.bf16.msra.mxu0 %v369_v34  ;;  %1388 = vmatprep.subr.mxu1 %v1491_v33 }
 0x234   :  { %1396 = vmatprep.mubr.msk.f32.mxu1 %vm1492_vm12, %v1491_v33 }
 0x236   :  { %1322 = vmatmul.mubr.msk.bf16.vlgmr.msra.gmra.mxu0 %vm361_vm11, %v1439_v36 }
 0x237   :  { %416 = vmatprep.mubr.bf16.mxu0 %v2250_v3 }
 0x23e   :  { %1323 = vmatmul.mubr.msk.bf16.gmra.mxu0 %vm361_vm11, %v1440_v37 }
 0x2f6   :  { %v408_v40 = vpop.f32.mrf.mxu0 }
 0x2f7   :  { %v1845_v20 = vadd.f32 %v408_v40, %v334_v13 }
 0x2f8   :  { %v410_v41 = vpop.f32.mrf.mxu0 }
 0x2f9   :  { %v1841_v14 = vadd.f32 %v410_v41, %v334_v13  ;;  %v435_v30 = vmul.f32 %v1818_v62, %v1845_v20  ;;  %v730_v13 = vld [vmem:[%s2239_s2] sm:$0xf] }
 0x2fa   :  { %v412_v45 = vpop.f32.mrf.mxu0 }
 0x2fb   :  { %v1835_v42 = vadd.f32 %v412_v45, %v339_v4  ;;  %v436_v22 = vmul.f32 %v1821_v19, %v1841_v14 }
 0x2fc   :  { %v414_v50 = vpop.f32.mrf.mxu0 }
 0x2fd   :  { %v1831_v6 = vadd.f32 %v414_v50, %v339_v4  ;;  %v437_v21 = vmul.f32 %v1818_v62, %v1835_v42  ;;  %v443_v31 = vadd.f32 %v436_v22, %v435_v30  ;;  %v1861_v50 = vld [vmem:[%s2237_s0 + $0x68] sm:$0xff] }
 0x2fe   :  { %v418_v58 = vpop.f32.mrf.mxu0 }
 0x2ff   :  { %v1815_v59 = vadd.f32 %v418_v58, %v344_v55  ;;  %v438_v15 = vmul.f32 %v1821_v19, %v1831_v6  ;;  %v1887_v58 = vld [vmem:[%s2237_s0 + $0x58] sm:$0xff] }
 0x300   :  { %v420_v60 = vpop.f32.mrf.mxu0 }
 0x301   :  { %v1823_v63 = vadd.f32 %v420_v60, %v344_v55  ;;  %v439_v1 = vmul.f32 %v1818_v62, %v1815_v59  ;;  %v446_v29 = vadd.f32 %v438_v15, %v437_v21  ;;  %v1882_v55 = vld [vmem:[%s2237_s0 + $0x48] sm:$0xff]  ;;  %v460_v15 = vld [vmem:[%s2246_s9] sm:$0x3] }
 0x302   :  { %v422_v0 = vpop.f32.mrf.mxu0 }
 0x303   :  { %v440_v32 = vmul.f32 %v1821_v19, %v1823_v63  ;;  %v1829_v2 = vadd.f32 %v422_v0, %v349_v52 }
 0x304   :  { %v424_v5 = vpop.f32.mrf.mxu0 }
 0x305   :  { %v1833_v38 = vadd.f32 %v424_v5, %v349_v52  ;;  %v449_v7 = vadd.f32 %v440_v32, %v439_v1  ;;  %v441_v9 = vmul.f32 %v1818_v62, %v1829_v2  ;;  %v1872_v52 = vld [vmem:[%s2237_s0 + $0x60] sm:$0xff]  ;;  %v732_v5 = vpack.c.bf16 %v1887_v58, %v1882_v55 }
 0x306   :  { %v459_v32 = vld [vmem:[%s2245_s8] sm:$0x3]  ;;  %v733_v4 = vpack.c.bf16 %v1877_v54, %v1872_v52 }
 0x307   :  { %v442_v11 = vmul.f32 %v1821_v19, %v1833_v38  ;;  %450 = vadd.xlane.f32.xlu1 %v449_v7  ;;  %v1902_v7 = vld [vmem:[%s2237_s0 + $0x40] sm:$0xff] }
 0x309   :  { %v452_v17 = vadd.f32 %v442_v11, %v441_v9  ;;  %v1907_v9 = vld [vmem:[%s2237_s0 + $0x50] sm:$0xff] }
 0x30a   :  { %v731_v11 = vpack.c.bf16 %v1907_v9, %v1902_v7 }
 0x30b   :  { %453 = vadd.xlane.f32.xlu0 %v452_v17 }
 0x30f   :  { %447 = vadd.xlane.f32.xlu0 %v446_v29 }
 0x313   :  { %444 = vadd.xlane.f32.xlu0 %v443_v31 }
 0x318   :  { %738 = vperm.xlu1 %1438, %v1591_v12   ;;  %v1866_v12 = vld [vmem:[%s2237_s0 + $0x78] sm:$0xff] }
 0x319   :  { %v734_v0 = vpack.c.bf16 %v1866_v12, %v1861_v50 }
 0x390   :  { %v451_v34 = vpop.xlane.xlu1 %450 }
 0x391   :  { %v457_v40 = vmul.f32 0.00390625, %v451_v34 }
 0x394   :  { %v454_v36 = vpop.xlane.xlu0 %453  ;;  %v739_v30 = vpop.permute.xlu1 %738 }
 0x395   :  { %v458_v37 = vmul.f32 0.00390625, %v454_v36 }
 0x397   :  { %1389 = vmatpush3.msra.mxu1 %v458_v37 }
 0x398   :  { %1390 = vmatprep.subr.mxu1 %v1491_v33  ;;  %v448_v41 = vpop.xlane.xlu0 %447 }
 0x399   :  { %v456_v45 = vmul.f32 0.00390625, %v448_v41  ;;  %1391 = vmatpush3.msra.mxu1 %v457_v40 }
 0x39a   :  { %1392 = vmatprep.subr.mxu1 %v1491_v33 }
 0x39b   :  { %1393 = vmatpush3.msra.mxu1 %v456_v45 }
 0x39c   :  { %v445_v60 = vpop.xlane.xlu0 %444  ;;  %1394 = vmatprep.subr.mxu1 %v1491_v33 }
 0x39d   :  { %v455_v1 = vmul.f32 0.00390625, %v445_v60  ;;  %v1932_v60 = vld [vmem:[%s2247_s10] sm:$0xff] }
 0x39e   :  { %1401 = vmatprep.mubr.msk.f32.mxu0 %vm543_vm14, %v1932_v60 }
 0x39f   :  { %1395 = vmatpush3.msra.mxu1 %v455_v1  ;;  %v1941_v1 = vld [vmem:[%s2247_s10 + $0x8] sm:$0xff] }
 0x3a0   :  { %1397 = vmatmul.mubr.msk.f32.vlgmr.msra.gmra.mxu1 %vm65_vm0, %v459_v32  ;;  %756 = vmatprep.subr.bf16.mxu1 %v734_v0  ;;  %v1964_v32 = vld [vmem:[%s2247_s10 + $0x10] sm:$0xff] }
 0x3a1   :  { %757 = vmatpush1.bf16.msra.mxu1 %v733_v4  ;;  %776 = vmatprep.mubr.bf16.mxu1 %v2250_v3  ;;  %v1971_v4 = vld [vmem:[%s2247_s10 + $0x18] sm:$0xff] }
 0x3a2   :  { %758 = vmatprep.subr.bf16.mxu1 %v732_v5 }
 0x3a5   :  { %759 = vmatpush1.bf16.msra.mxu1 %v731_v11 }
 0x3a8   :  { %1342 = vmatmul.mubr.msk.bf16.vlgmr.msra.gmra.mxu1 %vm65_vm0, %v730_v13 }
 0x3a9   :  { %1004 = vmatprep.mubr.bf16.mxu1 %v2250_v3 }
 0x460   :  { %v530_v17 = vpop.f32.mrf.mxu1 }
 0x461   :  { %v531_v21 = vadd.f32 %v530_v17, %v460_v15 }
 0x462   :  { %v1398_v22 = vpop.f32.mrf.mxu1 }
 0x463   :  { %v534_v29 = vmax.f32 %v531_v21, 0.0 }
 0x465   :  { %1399 = vmatprep.subr.msk.mxu0 %vm556_vm13, %v534_v29 }
 0x466   :  { %1400 = vmatpush3.msk.msra.mxu0 %vm556_vm13, %v534_v29 }
 0x467   :  { %1402 = vmatmul.mubr.msk.f32.vlgmr.msra.gmra.mxu0 %vm543_vm14, %v1941_v1 }
 0x468   :  { %v778_v31 = vpop.f32.mrf.mxu1  ;;  %1404 = vmatprep.mubr.msk.f32.mxu0 %vm543_vm14, %v1964_v32 }
 0x469   :  { %v779_v34 = vadd.f32 %v778_v31, %v739_v30 }
 0x46a   :  { %v780_v36 = vpop.f32.mrf.mxu1 }
 0x46b   :  { %v1923_v37 = vmax.f32 %v779_v34, 0.0  ;;  %v781_v40 = vadd.f32 %v780_v36, %v739_v30  ;;  %1405 = vmatmul.mubr.msk.f32.gmra.mxu0 %vm543_vm14, %v1971_v4 }
 0x46c   :  { %v782_v41 = vpop.f32.mrf.mxu1  ;;  %909 = vmatprep.mubr.bf16.mxu0 %v2250_v3 }
 0x46d   :  { %827 = vrot.lane.b32.xlu1 %v1923_v37, %s1483_s3  ;;  %843 = vrot.lane.b32.xlu0 %v1923_v37, %s1484_s23  ;;  %v1934_v0 = vmax.f32 %v781_v40, 0.0 }
 0x46e   :  { %v783_v45 = vpop.f32.mrf.mxu1 }
 0x471   :  { %835 = vrot.lane.b32.xlu1 %v1923_v37, %s1485_s24  ;;  %829 = vrot.lane.b32.xlu0 %v1934_v0, %s1483_s3 }
 0x475   :  { %819 = vrot.lane.b32.xlu1 %v1923_v37, %s1486_s25  ;;  %837 = vrot.lane.b32.xlu0 %v1934_v0, %s1485_s24 }
 0x479   :  { %845 = vrot.lane.b32.xlu1 %v1934_v0, %s1484_s23  ;;  %821 = vrot.lane.b32.xlu0 %v1934_v0, %s1486_s25 }
 0x47d   :  { %803 = vrot.lane.b32.xlu1 %v1923_v37, %s1487_s26  ;;  %805 = vrot.lane.b32.xlu0 %v1934_v0, %s1487_s26 }
 0x481   :  { %811 = vrot.lane.b32.xlu1 %v1923_v37, %s1488_s27  ;;  %813 = vrot.lane.b32.xlu0 %v1934_v0, %s1488_s27 }
 0x485   :  { %787 = vrot.lane.b32.xlu1 %v1923_v37, %s1489_s28  ;;  %789 = vrot.lane.b32.xlu0 %v1934_v0, %s1489_s28 }
 0x489   :  { %795 = vrot.lane.b32.xlu1 %v1923_v37, %s1490_s29  ;;  %797 = vrot.lane.b32.xlu0 %v1934_v0, %s1490_s29 }
 0x48d   :  { %865 = vperm.xlu1 %1438, %v1645_v25   ;;  %947 = vperm.xlu0 %1437, %v1639_v24  }
 0x491   :  { %942 = vperm.xlu1 %1438, %v1656_v27   ;;  %937 = vperm.xlu0 %1437, %v1650_v26  }
 0x495   :  { %932 = vperm.xlu1 %1438, %v1663_v28  }
 0x4df   :  { %v828_v5 = vpop.permute.xlu1 %827  ;;  %v844_v11 = vpop.permute.xlu0 %843 }
 0x4e3   :  { %v836_v13 = vpop.permute.xlu1 %835  ;;  %v830_v15 = vpop.permute.xlu0 %829 }
 0x4e4   :  { %v832_v24 = vsel %vm203_vm2, %v830_v15, %v828_v5  ;;  %v831_v40 = vsel %vm203_vm2, %v828_v5, %v830_v15 }
 0x4e5   :  { %v834_v41 = vmul.f32 %v832_v24, %v1705_v48  ;;  %v833_v5 = vmul.f32 %v831_v40, %v1690_v44 }
 0x4e7   :  { %v820_v17 = vpop.permute.xlu1 %819  ;;  %v838_v21 = vpop.permute.xlu0 %837 }
 0x4e8   :  { %v840_v22 = vsel %vm220_vm1, %v838_v21, %v836_v13  ;;  %v839_v27 = vsel %vm220_vm1, %v836_v13, %v838_v21 }
 0x4e9   :  { %v842_v28 = vmul.f32 %v840_v22, %v1686_v43  ;;  %v841_v13 = vmul.f32 %v839_v27, %v1708_v49 }
 0x4eb   :  { %v846_v29 = vpop.permute.xlu1 %845  ;;  %v822_v30 = vpop.permute.xlu0 %821  ;;  %v858_v21 = vpack.c.bf16 %v842_v28, %v834_v41  ;;  %v857_v22 = vpack.c.bf16 %v841_v13, %v833_v5 }
 0x4ec   :  { %v847_v25 = vsel %vm237_vm3, %v844_v11, %v846_v29  ;;  %v848_v26 = vsel %vm237_vm3, %v846_v29, %v844_v11  ;;  %v824_v36 = vsel %vm186_vm4, %v822_v30, %v820_v17  ;;  %v823_v43 = vsel %vm186_vm4, %v820_v17, %v822_v30 }
 0x4ed   :  { %v849_v31 = vmul.f32 %v1697_v46, %v847_v25  ;;  %v850_v34 = vmul.f32 %v1702_v47, %v848_v26  ;;  %v826_v46 = vmul.f32 %v824_v36, %v1712_v51  ;;  %v825_v24 = vmul.f32 %v823_v43, %v1727_v61  ;;  %v861_v43 = vld [vmem:[%s2243_s4] sm:$0xf] }
 0x4ef   :  { %v859_v45 = vpack.c.bf16 %v849_v31, %v849_v31  ;;  %v860_v3 = vpack.c.bf16 %v850_v34, %v850_v34  ;;  %v804_v11 = vpop.permute.xlu1 %803  ;;  %v806_v29 = vpop.permute.xlu0 %805  ;;  %v856_v44 = vpack.c.bf16 %v826_v46, %v1934_v0  ;;  %v855_v27 = vpack.c.bf16 %v825_v24, %v1923_v37 }
 0x4f0   :  { %v807_v49 = vsel %vm152_vm6, %v804_v11, %v806_v29  ;;  %v808_v30 = vsel %vm152_vm6, %v806_v29, %v804_v11 }
 0x4f1   :  { %1343 = vmatprep.subr.msk.bf16.mxu0 %vm271_vm5, %v860_v3  ;;  %v872_v47 = vsel %vm271_vm5, %v859_v45, 0  ;;  %v810_v25 = vmul.f32 %v807_v49, %v1748_v16  ;;  %v809_v34 = vmul.f32 %v808_v30, %v1765_v39  ;;  %v1442_v30 = vld [vmem:[%s2244_s6 + $0x8] sm:$0xff]  }
 0x4f2   :  { %884 = vmatpush1.bf16.msra.mxu0 %v872_v47 }
 0x4f3   :  { %v812_v48 = vpop.permute.xlu1 %811  ;;  %885 = vmatprep.subr.bf16.mxu0 %v858_v21  ;;  %v814_v15 = vpop.permute.xlu0 %813 }
 0x4f4   :  { %v815_v51 = vsel %vm169_vm7, %v812_v48, %v814_v15  ;;  %v816_v3 = vsel %vm169_vm7, %v814_v15, %v812_v48 }
 0x4f5   :  { %v818_v17 = vmul.f32 %v815_v51, %v1739_v8  ;;  %v817_v28 = vmul.f32 %v816_v3, %v1751_v18 }
 0x4f6   :  { %886 = vmatpush1.bf16.msra.mxu0 %v857_v22 }
 0x4f7   :  { %v788_v61 = vpop.permute.xlu1 %787  ;;  %887 = vmatprep.subr.bf16.mxu0 %v856_v44  ;;  %v790_v26 = vpop.permute.xlu0 %789  ;;  %v854_v31 = vpack.c.bf16 %v818_v17, %v810_v25  ;;  %v853_v40 = vpack.c.bf16 %v817_v28, %v809_v34  ;;  %v1441_v17 = vld [vmem:[%s2244_s6] sm:$0xff]   ;;  %v2251_v44 = vmov 0  }
 0x4f8   :  { %v791_v8 = vsel %vm118_vm8, %v788_v61, %v790_v26  ;;  %v792_v0 = vsel %vm118_vm8, %v790_v26, %v788_v61  ;;  %v2068_v25 = vld [vmem:[%s2248_s11] sm:$0xff]  ;;  %v2074_v26 = vld [vmem:[%s2248_s11 + $0x10] sm:$0xff] }
 0x4f9   :  { %v793_v37 = vmul.f32 %v792_v0, %v1773_v23  ;;  %v794_v39 = vmul.f32 %v791_v8, %v1776_v53 }
 0x4fa   :  { %888 = vmatpush1.bf16.msra.mxu0 %v855_v27 }
 0x4fb   :  { %v796_v36 = vpop.permute.xlu1 %795  ;;  %889 = vmatprep.subr.bf16.mxu0 %v854_v31  ;;  %v798_v16 = vpop.permute.xlu0 %797  ;;  %v2080_v31 = vld [vmem:[%s2248_s11 + $0x18] sm:$0xff] }
 0x4fc   :  { %v799_v41 = vsel %vm135_vm9, %v796_v36, %v798_v16  ;;  %v800_v18 = vsel %vm135_vm9, %v798_v16, %v796_v36 }
 0x4fd   :  { %v801_v45 = vmul.f32 %v800_v18, %v1781_v56  ;;  %v802_v11 = vmul.f32 %v799_v41, %v1784_v57 }
 0x4fe   :  { %890 = vmatpush1.bf16.msra.mxu0 %v853_v40  ;;  %v2086_v40 = vld [vmem:[%s2248_s11 + $0x8] sm:$0xff] }
 0x4ff   :  { %v851_v29 = vpack.c.bf16 %v801_v45, %v793_v37  ;;  %v852_v13 = vpack.c.bf16 %v802_v11, %v794_v39 }
 0x501   :  { %891 = vmatprep.subr.bf16.mxu0 %v852_v13 }
 0x502   :  { %892 = vmatpush1.bf16.msra.mxu0 %v851_v29 }
 0x503   :  { %1407 = vmatprep.subr.mxu0 %v1491_v33 }
 0x505   :  { %1344 = vmatmul.mubr.msk.bf16.vlgmr.msra.gmra.mxu0 %vm267_vm10, %v861_v43 }
 0x506   :  { %1415 = vmatprep.mubr.msk.f32.mxu0 %vm1492_vm12, %v1491_v33 }
 0x508   :  { %v866_v57 = vpop.permute.xlu1 %865  ;;  %v948_v18 = vpop.permute.xlu0 %947 }
 0x50c   :  { %v943_v37 = vpop.permute.xlu1 %942 }
 0x527   :  { %v1403_v35 = vpop.f32.mrf.mxu0 }
 0x528   :  { %v632_v45 = vadd.f32 %v1403_v35, %v2086_v40 }
 0x529   :  { %v626_v23 = vpop.f32.mrf.mxu0 }
 0x52a   :  { %v627_v61 = vadd.f32 %v626_v23, %v2068_v25 }
 0x52b   :  { %v1406_v53 = vpop.f32.mrf.mxu0 }
 0x52c   :  { %v1330_v27 = vmul.f32 -1.442695, %v627_v61 }
 0x52d   :  { %v636_v56 = vpop.f32.mrf.mxu0 }
 0x52e   :  { %v637_v28 = vadd.f32 %v636_v56, %v2074_v26  ;;  %1443 = vpow2.f32 %v1330_v27 }
 0x530   :  { %v1332_v34 = vmul.f32 -1.442695, %v637_v28 }
 0x532   :  { %1445 = vpow2.f32 %v1332_v34 }
 0x53b   :  { %v1444_v23 = vpop.eup %1443 }
 0x5c5   :  { %v911_v46 = vpop.f32.mrf.mxu0 }
 0x5c6   :  { %v912_v47 = vadd.f32 %v911_v46, %v866_v57 }
 0x5c7   :  { %v913_v21 = vpop.f32.mrf.mxu0 }
 0x5c8   :  { %v918_v5 = vmax.f32 %v912_v47, 0.0  ;;  %v914_v48 = vadd.f32 %v913_v21, %v866_v57  ;;  %v938_v47 = vpop.permute.xlu0 %937 }
 0x5c9   :  { %v915_v15 = vpop.f32.mrf.mxu0 }
 0x5ca   :  { %v924_v22 = vpack.c.bf16 %v918_v5, %v918_v5  ;;  %v919_v24 = vmax.f32 %v914_v48, 0.0  ;;  %v657_v15 = vadd.f32 1.0, %v1444_v23 }
 0x5cb   :  { %v916_v49 = vpop.f32.mrf.mxu0 }
 0x5cc   :  { %v925_v51 = vpack.c.bf16 %v919_v24, %v919_v24  ;;  %v967_v3 = vsel %vm271_vm5, %v924_v22, 0  ;;  %v1446_v22 = vpop.eup %1445 }
 0x5cd   :  { %v659_v61 = vadd.f32 1.0, %v1446_v22 }
 0x5ce   :  { %1347 = vmatprep.subr.msk.bf16.mxu1 %vm271_vm5, %v925_v51 }
 0x5cf   :  { %987 = vmatpush1.bf16.msra.mxu1 %v967_v3  ;;  %v933_v3 = vpop.permute.xlu1 %932 }
 0x5d2   :  { %1348 = vmatmul.mubr.msk.bf16.vlgmr.msra.gmra.mxu1 %vm361_vm11, %v1441_v17 }
 0x5d3   :  { %1014 = vmatprep.mubr.bf16.mxu1 %v2251_v44 }
 0x5da   :  { %1349 = vmatmul.mubr.msk.bf16.gmra.mxu1 %vm361_vm11, %v1442_v30 }
 0x5db   :  { %1420 = vmatprep.mubr.msk.f32.mxu1 %vm543_vm14, %v1932_v60  ;;  %v642_v60 = vadd.f32 %v1406_v53, %v2080_v31  ;;  %v1331_v53 = vmul.f32 -1.442695, %v632_v45 }
 0x5dd   :  { %v1333_v36 = vmul.f32 -1.442695, %v642_v60 }
 0x5df   :  { %1447 = vpow2.f32 %v1333_v36 }
 0x5e0   :  { %1449 = vpow2.f32 %v1331_v53 }
 0x5e1   :  { %1451 = vrcp.f32 %v657_v15 }
 0x5e2   :  { %1453 = vrcp.f32 %v659_v61 }
 0x5ec   :  { %v1448_v27 = vpop.eup %1447 }
 0x692   :  { %v1006_v8 = vpop.f32.mrf.mxu1 }
 0x693   :  { %v2113_v28 = vadd.f32 %v1006_v8, %v933_v3 }
 0x694   :  { %v1008_v0 = vpop.f32.mrf.mxu1 }
 0x695   :  { %v2109_v17 = vadd.f32 %v1008_v0, %v933_v3  ;;  %v1025_v0 = vmul.f32 %v2113_v28, %v1818_v62 }
 0x696   :  { %v1010_v16 = vpop.f32.mrf.mxu1 }
 0x697   :  { %v2103_v24 = vadd.f32 %v1010_v16, %v938_v47  ;;  %v1026_v34 = vmul.f32 %v2109_v17, %v1821_v19  ;;  %v660_v16 = vadd.f32 1.0, %v1448_v27 }
 0x698   :  { %v1012_v41 = vpop.f32.mrf.mxu1 }
 0x699   :  { %v2099_v5 = vadd.f32 %v1012_v41, %v938_v47  ;;  %v1027_v60 = vmul.f32 %v2103_v24, %v1818_v62  ;;  %v1033_v41 = vadd.f32 %v1026_v34, %v1025_v0  ;;  %1455 = vrcp.f32 %v660_v16  ;;  %v1049_v0 = vld [vmem:[%s2245_s8] sm:$0x3] }
 0x69a   :  { %v1016_v39 = vpop.f32.mrf.mxu1 }
 0x69b   :  { %v2089_v11 = vadd.f32 %v1016_v39, %v943_v37  ;;  %v1028_v44 = vmul.f32 %v2099_v5, %v1821_v19 }
 0x69c   :  { %v1018_v29 = vpop.f32.mrf.mxu1 }
 0x69d   :  { %v2091_v13 = vadd.f32 %v1018_v29, %v943_v37  ;;  %v1029_v56 = vmul.f32 %v2089_v11, %v1818_v62  ;;  %v1036_v36 = vadd.f32 %v1028_v44, %v1027_v60 }
 0x69e   :  { %v1020_v43 = vpop.f32.mrf.mxu1 }
 0x69f   :  { %v1030_v57 = vmul.f32 %v2091_v13, %v1821_v19  ;;  %v2097_v46 = vadd.f32 %v1020_v43, %v948_v18 }
 0x6a0   :  { %v1022_v21 = vpop.f32.mrf.mxu1 }
 0x6a1   :  { %v2101_v35 = vadd.f32 %v1022_v21, %v948_v18  ;;  %v1039_v48 = vadd.f32 %v1030_v57, %v1029_v56  ;;  %v1031_v49 = vmul.f32 %v2097_v46, %v1818_v62  ;;  %v1450_v18 = vpop.eup %1449  ;;  %v1475_v21 = vld [vmem:[%s2237_s0 + $0x8] sm:$0xff] }
 0x6a2   :  { %v1452_v8 = vpop.eup %1451  ;;  %v658_v37 = vadd.f32 1.0, %v1450_v18 }
 0x6a3   :  { %v1032_v51 = vmul.f32 %v2101_v35, %v1821_v19  ;;  %1040 = vadd.xlane.f32.xlu1 %v1039_v48  ;;  %v1454_v39 = vpop.eup %1453 }
 0x6a4   :  { %1457 = vrcp.f32 %v658_v37 }
 0x6a5   :  { %v1042_v30 = vadd.f32 %v1032_v51, %v1031_v49 }
 0x6a6   :  { %v1456_v45 = vpop.eup %1455 }
 0x6a7   :  { %1043 = vadd.xlane.f32.xlu0 %v1042_v30 }
 0x6ab   :  { %1037 = vadd.xlane.f32.xlu0 %v1036_v36 }
 0x6af   :  { %1034 = vadd.xlane.f32.xlu0 %v1033_v41 }
 0x6b1   :  { %v1458_v19 = vpop.eup %1457 }
 0x6b4   :  { %671 = vperm.xlu1 %1438, %v1452_v8  }
 0x6b8   :  { %681 = vperm.xlu1 %1438, %v1454_v39  }
 0x6bc   :  { %686 = vperm.xlu1 %1438, %v1456_v45  }
 0x6c5   :  { %676 = vperm.xlu0 %1437, %v1458_v19  }
 0x72c   :  { %v1041_v29 = vpop.xlane.xlu1 %1040 }
 0x72d   :  { %v1047_v57 = vmul.f32 0.00390625, %v1041_v29 }
 0x730   :  { %v672_v43 = vpop.permute.xlu1 %671  ;;  %v1044_v23 = vpop.xlane.xlu0 %1043 }
 0x731   :  { %v689_v62 = vmul.f32 %v672_v43, %v1845_v20  ;;  %v690_v53 = vmul.f32 %v672_v43, %v1841_v14  ;;  %v1048_v56 = vmul.f32 0.00390625, %v1044_v23 }
 0x733   :  { %v697_v47 = vadd.f32 %v689_v62, %v1583_v10  ;;  %v698_v48 = vadd.f32 %v1475_v21, %v690_v53  ;;  %1408 = vmatpush3.msra.mxu0 %v1048_v56 }
 0x734   :  { %v682_v15 = vpop.permute.xlu1 %681  ;;  %1409 = vmatprep.subr.mxu0 %v1491_v33  ;;  %v1038_v22 = vpop.xlane.xlu0 %1037 }
 0x735   :  { %v705_v49 = vmax.f32 %v697_v47, 0.0  ;;  %v706_v51 = vmax.f32 %v698_v48, 0.0  ;;  %v693_v20 = vmul.f32 %v682_v15, %v1815_v59  ;;  %v694_v14 = vmul.f32 %v682_v15, %v1823_v63  ;;  %1410 = vmatpush3.msra.mxu0 %v1047_v57 }
 0x736   :  { %v1046_v3 = vmul.f32 0.00390625, %v1038_v22  ;;  %1411 = vmatprep.subr.mxu0 %v1491_v33 }
 0x737   :  { %713 = vst [vmem:[%s2249_s12] sm:$0xff] %v705_v49  ;;  %714 = vst [vmem:[%s2249_s12 + $0x8] sm:$0xff] %v706_v51 }
 0x738   :  { %1412 = vmatpush3.msra.mxu0 %v1046_v3  ;;  %v687_v30 = vpop.permute.xlu1 %686  ;;  %v1035_v61 = vpop.xlane.xlu0 %1034 }
 0x739   :  { %v695_v34 = vmul.f32 %v687_v30, %v1829_v2  ;;  %v696_v36 = vmul.f32 %v687_v30, %v1833_v38  ;;  %1413 = vmatprep.subr.mxu0 %v1491_v33  ;;  %v1045_v16 = vmul.f32 0.00390625, %v1035_v61 }
 0x73b   :  { %1414 = vmatpush3.msra.mxu0 %v1045_v16 }
 0x73c   :  { %1416 = vmatmul.mubr.msk.f32.vlgmr.msra.gmra.mxu0 %vm65_vm0, %v1049_v0 }
 0x73e   :  { %v1476_v10 = vld [vmem:[%s2237_s0 + $0x20] sm:$0xff]  ;;  %v1477_v59 = vld [vmem:[%s2237_s0 + $0x28] sm:$0xff] }
 0x73f   :  { %v701_v44 = vadd.f32 %v1476_v10, %v693_v20  ;;  %v702_v63 = vadd.f32 %v1477_v59, %v694_v14 }
 0x740   :  { %v677_v37 = vpop.permute.xlu0 %676 }
 0x741   :  { %v709_v27 = vmax.f32 %v701_v44, 0.0  ;;  %v710_v60 = vmax.f32 %v702_v63, 0.0  ;;  %v691_v39 = vmul.f32 %v677_v37, %v1835_v42  ;;  %v692_v45 = vmul.f32 %v677_v37, %v1831_v6  ;;  %v1050_v6 = vld [vmem:[%s2246_s9] sm:$0x3] }
 0x743   :  { %717 = vst [vmem:[%s2249_s12 + $0x20] sm:$0xff] %v709_v27  ;;  %718 = vst [vmem:[%s2249_s12 + $0x28] sm:$0xff] %v710_v60 }
 0x74a   :  { %v1478_v2 = vld [vmem:[%s2237_s0 + $0x30] sm:$0xff]  ;;  %v1479_v33 = vld [vmem:[%s2237_s0 + $0x38] sm:$0xff] }
 0x74b   :  { %v703_v38 = vadd.f32 %v1478_v2, %v695_v34  ;;  %v704_v41 = vadd.f32 %v1479_v33, %v696_v36 }
 0x74d   :  { %v711_v18 = vmax.f32 %v703_v38, 0.0  ;;  %v712_v8 = vmax.f32 %v704_v41, 0.0 }
 0x74f   :  { %719 = vst [vmem:[%s2249_s12 + $0x30] sm:$0xff] %v711_v18  ;;  %720 = vst [vmem:[%s2249_s12 + $0x38] sm:$0xff] %v712_v8 }
 0x756   :  { %v1480_v19 = vld [vmem:[%s2237_s0 + $0x10] sm:$0xff]  ;;  %v1481_v43 = vld [vmem:[%s2237_s0 + $0x18] sm:$0xff] }
 0x757   :  { %v699_v29 = vadd.f32 %v1480_v19, %v691_v39  ;;  %v700_v23 = vadd.f32 %v1481_v43, %v692_v45 }
 0x759   :  { %v707_v62 = vmax.f32 %v699_v29, 0.0  ;;  %v708_v53 = vmax.f32 %v700_v23, 0.0 }
 0x75b   :  { %715 = vst [vmem:[%s2249_s12 + $0x10] sm:$0xff] %v707_v62  ;;  %716 = vst [vmem:[%s2249_s12 + $0x18] sm:$0xff] %v708_v53 }
 0x7fc   :  { %v1120_v42 = vpop.f32.mrf.mxu0 }
 0x7fd   :  { %v1121_v56 = vadd.f32 %v1120_v42, %v1050_v6 }
 0x7fe   :  { %v1417_v57 = vpop.f32.mrf.mxu0 }
 0x7ff   :  { %v1124_v47 = vmax.f32 %v1121_v56, 0.0 }
 0x801   :  { %1418 = vmatprep.subr.msk.mxu1 %vm556_vm13, %v1124_v47 }
 0x802   :  { %1419 = vmatpush3.msk.msra.mxu1 %vm556_vm13, %v1124_v47 }
 0x803   :  { %1421 = vmatmul.mubr.msk.f32.vlgmr.msra.gmra.mxu1 %vm543_vm14, %v1941_v1 }
 0x804   :  { %1423 = vmatprep.mubr.msk.f32.mxu1 %vm543_vm14, %v1964_v32 }
 0x807   :  { %1424 = vmatmul.mubr.msk.f32.gmra.mxu1 %vm543_vm14, %v1971_v4 }
 0x8c3   :  { %v1422_v21 = vpop.f32.mrf.mxu1 }
 0x8c4   :  { %v1220_v48 = vadd.f32 %v1422_v21, %v2086_v40 }
 0x8c5   :  { %v1214_v15 = vpop.f32.mrf.mxu1 }
 0x8c6   :  { %v1357_v22 = vmul.f32 -1.442695, %v1220_v48  ;;  %v1215_v49 = vadd.f32 %v1214_v15, %v2068_v25 }
 0x8c7   :  { %v1425_v51 = vpop.f32.mrf.mxu1 }
 0x8c8   :  { %1459 = vpow2.f32 %v1357_v22  ;;  %v1356_v20 = vmul.f32 -1.442695, %v1215_v49  ;;  %v1230_v14 = vadd.f32 %v1425_v51, %v2080_v31 }
 0x8c9   :  { %v1224_v3 = vpop.f32.mrf.mxu1 }
 0x8ca   :  { %1461 = vpow2.f32 %v1356_v20  ;;  %v1359_v1 = vmul.f32 -1.442695, %v1230_v14  ;;  %v1225_v32 = vadd.f32 %v1224_v3, %v2074_v26 }
 0x8cc   :  { %1463 = vpow2.f32 %v1359_v1  ;;  %v1358_v10 = vmul.f32 -1.442695, %v1225_v32 }
 0x8ce   :  { %1465 = vpow2.f32 %v1358_v10 }
 0x8d5   :  { %v1460_v4 = vpop.eup %1459 }
 0x8d6   :  { %v1246_v44 = vadd.f32 1.0, %v1460_v4 }
 0x8d7   :  { %v1462_v40 = vpop.eup %1461 }
 0x8d8   :  { %1467 = vrcp.f32 %v1246_v44  ;;  %v1245_v59 = vadd.f32 1.0, %v1462_v40 }
 0x8d9   :  { %v1464_v63 = vpop.eup %1463 }
 0x8da   :  { %1469 = vrcp.f32 %v1245_v59  ;;  %v1248_v25 = vadd.f32 1.0, %v1464_v63 }
 0x8db   :  { %v1466_v30 = vpop.eup %1465 }
 0x8dc   :  { %1471 = vrcp.f32 %v1248_v25  ;;  %v1247_v61 = vadd.f32 1.0, %v1466_v30 }
 0x8de   :  { %1473 = vrcp.f32 %v1247_v61 }
 0x8e5   :  { %v1468_v31 = vpop.eup %1467 }
 0x8e6   :  { %1264 = vperm.xlu1 %1438, %v1468_v31  }
 0x8e7   :  { %v1470_v27 = vpop.eup %1469 }
 0x8e8   :  { %1259 = vperm.xlu0 %1437, %v1470_v27  }
 0x8e9   :  { %v1472_v26 = vpop.eup %1471 }
 0x8ea   :  { %1274 = vperm.xlu1 %1438, %v1472_v26  }
 0x8eb   :  { %v1474_v60 = vpop.eup %1473 }
 0x8ec   :  { %1269 = vperm.xlu0 %1437, %v1474_v60  }
 0x961   :  { %v1265_v34 = vpop.permute.xlu1 %1264 }
 0x962   :  { %v1279_v36 = vmul.f32 %v1265_v34, %v2103_v24  ;;  %v1280_v16 = vmul.f32 %v1265_v34, %v2099_v5 }
 0x963   :  { %v1260_v0 = vpop.permute.xlu0 %1259 }
 0x964   :  { %v1287_v2 = vadd.f32 %v1907_v9, %v1279_v36  ;;  %v1288_v38 = vadd.f32 %v1887_v58, %v1280_v16  ;;  %v1277_v33 = vmul.f32 %v1260_v0, %v2113_v28  ;;  %v1278_v41 = vmul.f32 %v1260_v0, %v2109_v17 }
 0x965   :  { %v1275_v18 = vpop.permute.xlu1 %1274 }
 0x966   :  { %v1295_v8 = vmax.f32 %v1287_v2, 0.0  ;;  %v1296_v37 = vmax.f32 %v1288_v38, 0.0  ;;  %v1285_v39 = vadd.f32 %v1902_v7, %v1277_v33  ;;  %v1286_v45 = vadd.f32 %v1882_v55, %v1278_v41 }
 0x967   :  { %v1283_v24 = vmul.f32 %v1275_v18, %v2097_v46  ;;  %v1284_v5 = vmul.f32 %v1275_v18, %v2101_v35  ;;  %v1270_v19 = vpop.permute.xlu0 %1269 }
 0x968   :  { %1362 = vst [vmem:[%s2249_s12 + $0x50] sm:$0xff] %v1295_v8  ;;  %1363 = vst [vmem:[%s2249_s12 + $0x58] sm:$0xff] %v1296_v37  ;;  %v1293_v58 = vmax.f32 %v1285_v39, 0.0  ;;  %v1294_v9 = vmax.f32 %v1286_v45, 0.0  ;;  %v1281_v17 = vmul.f32 %v1270_v19, %v2089_v11  ;;  %v1282_v7 = vmul.f32 %v1270_v19, %v2091_v13 }
 0x969   :  { %v1291_v55 = vadd.f32 %v1877_v54, %v1283_v24  ;;  %v1292_v46 = vadd.f32 %v1866_v12, %v1284_v5 }
 0x96a   :  { %1360 = vst [vmem:[%s2249_s12 + $0x40] sm:$0xff] %v1293_v58  ;;  %1361 = vst [vmem:[%s2249_s12 + $0x48] sm:$0xff] %v1294_v9  ;;  %v1289_v35 = vadd.f32 %v1872_v52, %v1281_v17  ;;  %v1290_v28 = vadd.f32 %v1861_v50, %v1282_v7 }
 0x96b   :  { %v1299_v29 = vmax.f32 %v1291_v55, 0.0  ;;  %v1300_v11 = vmax.f32 %v1292_v46, 0.0 }
 0x96c   :  { %v1297_v43 = vmax.f32 %v1289_v35, 0.0  ;;  %v1298_v13 = vmax.f32 %v1290_v28, 0.0 }
 0x96d   :  { %1366 = vst [vmem:[%s2249_s12 + $0x70] sm:$0xff] %v1299_v29  ;;  %1367 = vst [vmem:[%s2249_s12 + $0x78] sm:$0xff] %v1300_v11 }
 0x96e   :  { %1364 = vst [vmem:[%s2249_s12 + $0x60] sm:$0xff] %v1297_v43  ;;  %1365 = vst [vmem:[%s2249_s12 + $0x68] sm:$0xff] %v1298_v13 }

</bundles_post_ra>
